<compile_context>
chip_gen: v5e
topology: v5e:2x2
jax: 0.10.0
libtpu: 0.0.40
codegen_flags: <defaults>
</compile_context>

<pallas_src>
import functools

import jax
import jax.numpy as jnp
from jax.experimental import pallas as pl
from jax.experimental.pallas import tpu as pltpu

_SUB = 8      # f32 vreg sublane count (accumulator fold granularity)
_LANES = 128  # vreg lane count; the wrapper always presents [M, 128]


def _focal_kl_partial_kernel(pred_ref, target_ref, out_ref, *, gamma):
    i = pl.program_id(1)  # reduction axis (innermost), per parallel split

    @pl.when(i == 0)
    def _():
        out_ref[...] = jnp.zeros_like(out_ref)

    xin = pred_ref[...]    # student logits, input dtype (f32 or bf16)
    tin = target_ref[...]  # teacher logits

    # Transcendental chain stays in the input dtype (bf16 EUP path on v6e/v7x;
    # Mosaic upcasts internally on v5e which has no bf16 EUP/VPU).
    # log(1-p) = log_sigmoid(-x) = -(max(x,0) + log1p(exp(-|x|)))
    log_1mp = -(jnp.maximum(xin, 0) + jnp.log1p(jnp.exp(-jnp.abs(xin))))
    log_1mq = -(jnp.maximum(tin, 0) + jnp.log1p(jnp.exp(-jnp.abs(tin))))
    # p = sigmoid(x) = exp(x + log(1-p)); q likewise (2 extra exps, no recip).
    p = jnp.exp(xin + log_1mp)
    q = jnp.exp(tin + log_1mq)

    # Upcast for the VALU work and the accumulation.
    x = xin.astype(jnp.float32)
    t = tin.astype(jnp.float32)
    lp = log_1mp.astype(jnp.float32)
    lq = log_1mq.astype(jnp.float32)
    p = p.astype(jnp.float32)
    q = q.astype(jnp.float32)

    # kl = q*(log q - log p) + (1-q)*(log(1-q) - log(1-p))
    #    = q*(t - x) + (log(1-q) - log(1-p))     [log s(z) - log s(-z) = z]
    kl = q * (t - x) + (lq - lp)

    diff = jnp.abs(q - p)
    g = float(gamma)
    if g.is_integer() and g >= 0:
        gi = int(g)
        if gi == 0:
            loss = kl
        else:
            focal = diff                      # gamma==2 -> diff*diff, no ones()
            for _ in range(gi - 1):
                focal = focal * diff
            loss = focal * kl
    else:
        # TODO(synk): non-integer gamma path is only valid for gamma > 0
        # (guarded in the wrapper); |q-p|==0 gives ~(1e-12)**gamma times kl==0.
        loss = jnp.exp(g * jnp.log(diff + 1e-12)) * kl

    tr, c = loss.shape
    # Fold rows into the resident (8, 128) f32 accumulator: pure VALU adds,
    # no cross-lane XLU reduce and no lane-sparse scalar store in the hot loop.
    partial = loss.reshape(tr // _SUB, _SUB, c).sum(axis=0)
    out_ref[...] += partial[None, :, :]


def _default_num_splits():
    # 2 TensorCores per chip on v7x; v5e/v6e have 1 (the extra split only
    # shrinks tiles and adds a grid axis there).
    try:
        kind = jax.devices()[0].device_kind.lower()
    except Exception:
        return 1
    return 2 if ("v7" in kind or "7x" in kind) else 1


def focal_kl_loss(pred, target, *, gamma=2, loss_weight=1.0, reduction="mean",
                  avg_factor=None, tile_rows=None, num_splits=None):
    """Pallas-backed FocalKLLoss.forward (use_sigmoid=True, weight=None path).

    pred/target: same-shape arrays of student / teacher logits. f32 and bf16
    are used natively (bf16 keeps the EUP chain in bf16); other float dtypes
    are upcast to f32. The loss is elementwise + a global reduction, so the
    wrapper flattens to a lane-dense [M, 128] layout regardless of C.
    """
    assert pred.shape == target.shape
    n_elem = pred.size
    if n_elem == 0:
        raise ValueError("empty input")

    g = float(gamma)
    if not (g.is_integer() and g >= 0) and g <= 0:
        raise ValueError("non-integer gamma must be > 0")

    dt = jnp.promote_types(pred.dtype, target.dtype)
    dt = jnp.bfloat16 if dt == jnp.bfloat16 else jnp.float32
    pred = pred.astype(dt)
    target = target.astype(dt)
    itemsize = jnp.dtype(dt).itemsize
    grain = 16 if itemsize == 2 else 8      # native sublane tile of the dtype

    if num_splits is None:
        num_splits = _default_num_splits()
    num_splits = max(1, int(num_splits))

    # Lane-dense flattening: [*, C] -> [M, 128]. Free for row-major inputs
    # whose element count is already a multiple of 128 (e.g. N=256, C=80).
    rows_total = -(-n_elem // _LANES)

    # Tile sizing: ~2 MiB per input block (amortizes ~0.35 us/step overhead,
    # and stays within v7x's tighter VMEM given ~8-10 live full-tile f32
    # temporaries), never bigger than one split needs, multiple of `grain`.
    if tile_rows is None:
        tile_rows = (2 * 1024 * 1024) // (_LANES * itemsize)  # 4096 f32 / 8192 bf16
    rows_per_split = -(-rows_total // num_splits)
    rows_per_split = -(-rows_per_split // grain) * grain
    tile_rows = min(int(tile_rows), rows_per_split)
    tile_rows = max(grain, (tile_rows // grain) * grain)

    chunk = tile_rows * num_splits
    rows_pad = -(-rows_total // chunk) * chunk
    flat_pad = rows_pad * _LANES

    pred_f = pred.reshape(-1)
    target_f = target.reshape(-1)
    if flat_pad != n_elem:
        # Padded elements have pred = target = 0 -> p = q -> kl = 0 -> exactly
        # zero loss contribution (independent of dtype/rounding).
        pad = (0, flat_pad - n_elem)
        pred_f = jnp.pad(pred_f, pad)
        target_f = jnp.pad(target_f, pad)
    pred_2d = pred_f.reshape(rows_pad, _LANES)
    target_2d = target_f.reshape(rows_pad, _LANES)

    tiles_per_split = rows_pad // chunk
    block_bytes = tile_rows * _LANES * itemsize
    # 2 inputs x 2 pipeline buffers + output + headroom; explicit because the
    # v5e scoped-VMEM default is only 16 MiB. Capped below v7x physical VMEM.
    vmem_limit = int(min(48 * 1024 * 1024,
                         max(32 * 1024 * 1024, 6 * block_bytes + (4 << 20))))

    in_map = lambda s, i: (s * tiles_per_split + i, 0)
    # TODO(synk): on v5e, pipeline_mode=pl.Buffered(3) on the two input specs
    # can hide DMA jitter when compute ~= DMA; left at the default depth here.
    partials = pl.pallas_call(
        functools.partial(_focal_kl_partial_kernel, gamma=g),
        out_shape=jax.ShapeDtypeStruct((num_splits, _SUB, _LANES), jnp.float32),
        grid_spec=pltpu.PrefetchScalarGridSpec(
            num_scalar_prefetch=0,
            grid=(num_splits, tiles_per_split),
            in_specs=[
                pl.BlockSpec((tile_rows, _LANES), in_map),
                pl.BlockSpec((tile_rows, _LANES), in_map),
            ],
            out_specs=pl.BlockSpec((1, _SUB, _LANES), lambda s, i: (s, 0, 0)),
        ),
        compiler_params=pltpu.CompilerParams(
            # TODO(synk): on v7x, verify with xprof that the leading 'parallel'
            # axis shards across both TensorCores; if not, switch to
            # pltpu.CORE_PARALLEL or a pl.core_map over a 2-core mesh.
            dimension_semantics=("parallel", "arbitrary"),
            vmem_limit_bytes=vmem_limit),
    )(pred_2d, target_2d)

    total = jnp.sum(partials, dtype=jnp.float32)

    if reduction == "mean":
        denom = float(n_elem) if avg_factor is None else avg_factor
        out = total / denom
    elif reduction == "sum":
        out = total
    else:
        # TODO(synk): reduction='none' needs a per-element map output kernel.
        raise NotImplementedError("reduction='none' not supported here")
    return loss_weight * out


def focal_kl_loss_ref(pred, target, *, gamma=2, loss_weight=1.0):
    x = pred.astype(jnp.float32)
    t = target.astype(jnp.float32)
    p = jax.nn.sigmoid(x)
    q = jax.nn.sigmoid(t)
    kl = (q * (jax.nn.log_sigmoid(t) - jax.nn.log_sigmoid(x))
          + (1.0 - q) * (jax.nn.log_sigmoid(-t) - jax.nn.log_sigmoid(-x)))
    focal = jnp.abs(q - p) ** gamma
    return loss_weight * jnp.mean(focal * kl)


if __name__ == "__main__":
    key = jax.random.PRNGKey(0)
    k1, k2, k3, k4, k5, k6 = jax.random.split(key, 6)

    # C=80 (typical mmdet detection head): exercises the lane-dense flatten
    # path (256*80 = 160 lane-dense rows of 128).
    pred = jax.random.normal(k1, (256, 80), dtype=jnp.float32) * 2.0
    target = jax.random.normal(k2, (256, 80), dtype=jnp.float32) * 2.0
    out = focal_kl_loss(pred, target, gamma=2, loss_weight=1.0, reduction="mean")
    out = jax.block_until_ready(out)
    ref = focal_kl_loss_ref(pred, target, gamma=2, loss_weight=1.0)
    assert jnp.allclose(out, ref, rtol=1e-4, atol=1e-6), (out, ref)

    # bf16 inputs with a non-128-multiple element count: exercises the tail
    # zero-padding, the bf16 sublane grain (16), and the bf16 EUP chain
    # (looser tolerance vs the f32 reference).
    pred_b = (jax.random.normal(k3, (200, 90), dtype=jnp.float32) * 2.0
              ).astype(jnp.bfloat16)
    target_b = (jax.random.normal(k4, (200, 90), dtype=jnp.float32) * 2.0
                ).astype(jnp.bfloat16)
    out_b = focal_kl_loss(pred_b, target_b, gamma=2.0, loss_weight=0.5,
                          reduction="mean")
    out_b = jax.block_until_ready(out_b)
    ref_b = focal_kl_loss_ref(pred_b, target_b, gamma=2, loss_weight=0.5)
    assert jnp.allclose(out_b, ref_b, rtol=2e-2, atol=1e-4), (out_b, ref_b)

    # sum reduction + gamma=1, explicit 2-way split (exercises the multi-split
    # grid / per-split partial accumulators regardless of the host chip).
    pred_s = jax.random.normal(k5, (64, 128), dtype=jnp.float32)
    target_s = jax.random.normal(k6, (64, 128), dtype=jnp.float32)
    out_s = focal_kl_loss(pred_s, target_s, gamma=1, loss_weight=2.0,
                          reduction="sum", num_splits=2)
    out_s = jax.block_until_ready(out_s)
    ps = jax.nn.sigmoid(pred_s)
    qs = jax.nn.sigmoid(target_s)
    kls = (qs * (jax.nn.log_sigmoid(target_s) - jax.nn.log_sigmoid(pred_s))
           + (1.0 - qs) * (jax.nn.log_sigmoid(-target_s)
                           - jax.nn.log_sigmoid(-pred_s)))
    ref_s = 2.0 * jnp.sum(jnp.abs(qs - ps) * kls)
    assert jnp.allclose(out_s, ref_s, rtol=1e-4, atol=1e-5), (out_s, ref_s)

    print("KERNEL_OK")
</pallas_src>

<mosaic_0001>
module attributes {stable_mosaic.version = 11 : i64} {
  func.func @_focal_kl_partial_kernel(%arg0: i32, %arg1: i32, %arg2: memref<160x128xf32, #tpu.memory_space<vmem>>, %arg3: memref<160x128xf32, #tpu.memory_space<vmem>>, %arg4: memref<1x8x128xf32, #tpu.memory_space<vmem>>) attributes {dimension_semantics = [#tpu.dimension_semantics<parallel>, #tpu.dimension_semantics<arbitrary>], iteration_bounds = array<i64: 1, 1>, scalar_prefetch = 0 : i64, scratch_operands = 0 : i64, tpu.core_type = #tpu.core_type<tc>, window_params = [{transform_indices = @transform_0, window_bounds = array<i64: 160, 128>}, {transform_indices = @transform_1, window_bounds = array<i64: 160, 128>}, {transform_indices = @transform_2, window_bounds = array<i64: 1, 8, 128>}]} {
    %c0_i32 = arith.constant 0 : i32
    %0 = arith.cmpi eq, %arg1, %c0_i32 : i32
    %1 = arith.extui %0 : i1 to i32
    %c0_i32_0 = arith.constant 0 : i32
    %2 = arith.cmpi ne, %1, %c0_i32_0 : i32
    scf.if %2 {
      %cst_16 = arith.constant 0.000000e+00 : f32
      %43 = vector.broadcast %cst_16 : f32 to vector<1x8x128xf32>
      %c0_17 = arith.constant 0 : index
      %c0_18 = arith.constant 0 : index
      %c0_19 = arith.constant 0 : index
      %44 = vector.load %arg4[%c0_17, %c0_18, %c0_19] : memref<1x8x128xf32, #tpu.memory_space<vmem>>, vector<1x8x128xf32>
      tpu.vector_store %arg4[%c0_17, %c0_18, %c0_19], %43 {strides = array<i32>} : memref<1x8x128xf32, #tpu.memory_space<vmem>>, vector<1x8x128xf32>,
    } else {
    }
    %c0 = arith.constant 0 : index
    %c0_1 = arith.constant 0 : index
    %3 = vector.load %arg2[%c0, %c0_1] : memref<160x128xf32, #tpu.memory_space<vmem>>, vector<160x128xf32>
    %c0_2 = arith.constant 0 : index
    %c0_3 = arith.constant 0 : index
    %4 = vector.load %arg3[%c0_2, %c0_3] : memref<160x128xf32, #tpu.memory_space<vmem>>, vector<160x128xf32>
    %cst = arith.constant 0.000000e+00 : f32
    %5 = vector.broadcast %cst : f32 to vector<160x128xf32>
    %6 = arith.maximumf %3, %5 : vector<160x128xf32>
    %7 = math.absf %3 : vector<160x128xf32>
    %cst_4 = arith.constant 0.000000e+00 : f32
    %8 = vector.broadcast %cst_4 : f32 to vector<160x128xf32>
    %9 = arith.subf %8, %7 : vector<160x128xf32>
    %10 = math.exp %9 : vector<160x128xf32>
    %11 = math.log1p %10 : vector<160x128xf32>
    %12 = arith.addf %6, %11 : vector<160x128xf32>
    %cst_5 = arith.constant 0.000000e+00 : f32
    %13 = vector.broadcast %cst_5 : f32 to vector<160x128xf32>
    %14 = arith.subf %13, %12 : vector<160x128xf32>
    %cst_6 = arith.constant 0.000000e+00 : f32
    %15 = vector.broadcast %cst_6 : f32 to vector<160x128xf32>
    %16 = arith.maximumf %4, %15 : vector<160x128xf32>
    %17 = math.absf %4 : vector<160x128xf32>
    %cst_7 = arith.constant 0.000000e+00 : f32
    %18 = vector.broadcast %cst_7 : f32 to vector<160x128xf32>
    %19 = arith.subf %18, %17 : vector<160x128xf32>
    %20 = math.exp %19 : vector<160x128xf32>
    %21 = math.log1p %20 : vector<160x128xf32>
    %22 = arith.addf %16, %21 : vector<160x128xf32>
    %cst_8 = arith.constant 0.000000e+00 : f32
    %23 = vector.broadcast %cst_8 : f32 to vector<160x128xf32>
    %24 = arith.subf %23, %22 : vector<160x128xf32>
    %25 = arith.addf %3, %14 : vector<160x128xf32>
    %26 = math.exp %25 : vector<160x128xf32>
    %27 = arith.addf %4, %24 : vector<160x128xf32>
    %28 = math.exp %27 : vector<160x128xf32>
    %29 = arith.subf %4, %3 : vector<160x128xf32>
    %30 = arith.mulf %28, %29 : vector<160x128xf32>
    %31 = arith.subf %24, %14 : vector<160x128xf32>
    %32 = arith.addf %30, %31 : vector<160x128xf32>
    %33 = arith.subf %28, %26 : vector<160x128xf32>
    %34 = math.absf %33 : vector<160x128xf32>
    %35 = arith.mulf %34, %34 : vector<160x128xf32>
    %36 = arith.mulf %35, %32 : vector<160x128xf32>
    %37 = vector.shape_cast %36 : vector<160x128xf32> to vector<20x8x128xf32>
    %cst_9 = arith.constant dense<0.000000e+00> : vector<8x128xf32>
    %38 = vector.multi_reduction <add>, %37, %cst_9 [0] : vector<20x8x128xf32> to vector<8x128xf32>
    %c0_10 = arith.constant 0 : index
    %c0_11 = arith.constant 0 : index
    %c0_12 = arith.constant 0 : index
    %39 = vector.load %arg4[%c0_10, %c0_11, %c0_12] : memref<1x8x128xf32, #tpu.memory_space<vmem>>, vector<1x8x128xf32>
    %40 = vector.shape_cast %38 : vector<8x128xf32> to vector<1x8x128xf32>
    %41 = arith.addf %39, %40 : vector<1x8x128xf32>
    %c0_13 = arith.constant 0 : index
    %c0_14 = arith.constant 0 : index
    %c0_15 = arith.constant 0 : index
    %42 = vector.load %arg4[%c0_13, %c0_14, %c0_15] : memref<1x8x128xf32, #tpu.memory_space<vmem>>, vector<1x8x128xf32>
    tpu.vector_store %arg4[%c0_13, %c0_14, %c0_15], %41 {strides = array<i32>} : memref<1x8x128xf32, #tpu.memory_space<vmem>>, vector<1x8x128xf32>,
    return
  }
  func.func @transform_0(%arg0: i32, %arg1: i32) -> (i32, i32) {
    %c1_i32 = arith.constant 1 : i32
    %0 = arith.muli %arg0, %c1_i32 : i32
    %1 = arith.addi %0, %arg1 : i32
    %c0_i32 = arith.constant 0 : i32
    %c0_i32_0 = arith.constant 0 : i32
    return %1, %c0_i32 : i32, i32
  }
  func.func @transform_1(%arg0: i32, %arg1: i32) -> (i32, i32) {
    %c1_i32 = arith.constant 1 : i32
    %0 = arith.muli %arg0, %c1_i32 : i32
    %1 = arith.addi %0, %arg1 : i32
    %c0_i32 = arith.constant 0 : i32
    %c0_i32_0 = arith.constant 0 : i32
    return %1, %c0_i32 : i32, i32
  }
  func.func @transform_2(%arg0: i32, %arg1: i32) -> (i32, i32, i32) {
    %c0_i32 = arith.constant 0 : i32
    %c0_i32_0 = arith.constant 0 : i32
    %c0_i32_1 = arith.constant 0 : i32
    return %arg0, %c0_i32, %c0_i32_0 : i32, i32, i32
  }
}

</mosaic_0001>

<bundles_post_ra>
// kernel: tpu_custom_call.1
= control target key start
LH: loop header
LB: loop body
LE: loop exit
PB: predicated region body
PF: predicated region fallthrough
CT: control target
= control target key end

     0   :  { %7 = vsyncpa [#allocation3], 0  ;;  %s2982_s0 = inlined_call_operand.hbm [shape: f32[160,128], index: 0, kind: input, shape index: {}]   ;;  %s2983_s1 = inlined_call_operand.hbm [shape: f32[160,128], index: 1, kind: input, shape index: {}]   ;;  %s2984_s2 = inlined_call_operand.hbm [shape: f32[1,8,128], index: 2, kind: output, shape index: {}]  }
   0x1   :  { %8 = vsyncpa [#allocation6], 0 }
   0x2   :  { %9 = vsyncpa [#allocation4], 0  ;;  %s18_s11 = sshll.u32 %s2982_s0, 4  ;;  %s1410_s12 = smov [#allocation2]   ;;  %s19_s11 = int_to_ptr.hbm [resolvable:$true] %s18_s11 }
   0x3   :  { %s20_s13 = sshll.u32 %s1410_s12, 4  ;;  %s35_s16 = sshll.u32 %s2983_s1, 4  ;;  %s21_s13 = int_to_ptr.vmem [resolvable:$true] %s20_s13  ;;  %s36_s16 = int_to_ptr.hbm [resolvable:$true] %s35_s16 }
   0x4   :  { %s1411_s17 = smov 128   ;;  %s1412_s18 = smov 8  }
   0x5   :  { %26 = dma.hbm_to_vmem [thread:$0]  %s19_s11, 2560, %s21_s13, [#allocation3], %s1411_s17, %s1411_s17, %s1412_s18  }
   0x6   :  { %s1413_s19 = smov [#allocation5]  }
   0x7   :  { %s37_s20 = sshll.u32 %s1413_s19, 4  ;;  %s38_s20 = int_to_ptr.vmem [resolvable:$true] %s37_s20 }
   0x8   :  { %43 = dma.hbm_to_vmem [thread:$0]  %s36_s16, 2560, %s38_s20, [#allocation6], %s1411_s17, %s1411_s17, %s1412_s18  }
   0x9   :  { %1404 = dma.done.wait [#allocation3], 2560  }
   0xa   :  { %1405 = vsyncadd [#allocation3], 4294964736 }
   0xb   :  { %1406 = dma.done.wait [#allocation6], 2560  }
   0xc   :  { %1407 = vsyncadd [#allocation6], 4294964736  ;;  %v1436_v0 = vld [vmem:[#allocation2] sm:$0xff]  ;;  %v1438_v1 = vld [vmem:[#allocation2 + $0x8] sm:$0xff]  ;;  %s1414_s0 = smov [#allocation7]   ;;  %s1050_s23 = sshll.u32 %s2984_s2, 4  ;;  %s1051_s23 = int_to_ptr.hbm [resolvable:$true] %s1050_s23 }
   0xd   :  { %v1440_v2 = vld [vmem:[#allocation2 + $0x10] sm:$0xff]  ;;  %v1442_v3 = vld [vmem:[#allocation2 + $0x18] sm:$0xff]  ;;  %v121_v4 = vand.u32 2147483647, %v1436_v0  ;;  %v1445_v5 = vld [vmem:[#allocation2 + $0x20] sm:$0xff]  ;;  %s1048_s1 = sshll.u32 %s1414_s0, 4  ;;  %s1049_s1 = int_to_ptr.vmem [resolvable:$true] %s1048_s1 }
   0xe   :  { %v1447_v6 = vld [vmem:[#allocation2 + $0x28] sm:$0xff]  ;;  %v122_v9 = vand.u32 2147483647, %v1438_v1  ;;  %v1452_v10 = vld [vmem:[#allocation2 + $0x30] sm:$0xff]  ;;  %v1454_v11 = vld [vmem:[#allocation2 + $0x38] sm:$0xff] }
   0xf   :  { %3144 = vst [vmem:[#allocation11_spill] sm:$0xff] %v1454_v11  ;;  %v1456_v12 = vld [vmem:[#allocation2 + $0x40] sm:$0xff]  ;;  %v123_v14 = vand.u32 2147483647, %v1440_v2  ;;  %v1460_v15 = vld [vmem:[#allocation2 + $0x48] sm:$0xff]  ;;  %v1466_v20 = vld [vmem:[#allocation2 + $0x50] sm:$0xff] }
  0x10   :  { %3145 = vst [vmem:[#allocation12_spill] sm:$0xff] %v1456_v12  ;;  %v124_v19 = vand.u32 2147483647, %v1442_v3  ;;  %v1468_v21 = vld [vmem:[#allocation2 + $0x58] sm:$0xff]  ;;  %v125_v23 = vand.u32 2147483647, %v1445_v5 }
  0x11   :  { %3146 = vst [vmem:[#allocation13_spill] sm:$0xff] %v1460_v15  ;;  %v141_v24 = vsub.f32 0.0, %v121_v4  ;;  %v1472_v25 = vld [vmem:[#allocation2 + $0x60] sm:$0xff]  ;;  %v126_v28 = vand.u32 2147483647, %v1447_v6  ;;  %v142_v29 = vsub.f32 0.0, %v122_v9 }
  0x12   :  { %3147 = vst [vmem:[#allocation14_spill] sm:$0xff] %v1466_v20  ;;  %v1477_v30 = vld [vmem:[#allocation2 + $0x68] sm:$0xff]  ;;  %v127_v33 = vand.u32 2147483647, %v1452_v10  ;;  %v143_v34 = vsub.f32 0.0, %v123_v14  ;;  %v1482_v35 = vld [vmem:[#allocation2 + $0x70] sm:$0xff] }
  0x13   :  { %3148 = vst [vmem:[#allocation15_spill] sm:$0xff] %v1468_v21  ;;  %v128_v37 = vand.u32 2147483647, %v1454_v11  ;;  %v129_v38 = vand.u32 2147483647, %v1456_v12  ;;  %v144_v39 = vsub.f32 0.0, %v124_v19 }
  0x14   :  { %3149 = vst [vmem:[#allocation16_spill] sm:$0xff] %v1472_v25  ;;  %v1487_v40 = vld [vmem:[#allocation2 + $0x78] sm:$0xff]  ;;  %v130_v42 = vand.u32 2147483647, %v1460_v15  ;;  %v145_v43 = vsub.f32 0.0, %v125_v23  ;;  %v146_v47 = vsub.f32 0.0, %v126_v28 }
  0x15   :  { %3150 = vst [vmem:[#allocation17_spill] sm:$0xff] %v1477_v30  ;;  %v161_v44 = vmul.f32 1.442695, %v141_v24  ;;  %v131_v46 = vand.u32 2147483647, %v1466_v20  ;;  %v147_v51 = vsub.f32 0.0, %v127_v33 }
  0x16   :  { %3151 = vst [vmem:[#allocation18_spill] sm:$0xff] %v1482_v35  ;;  %v163_v48 = vmul.f32 1.442695, %v142_v29  ;;  %v132_v50 = vand.u32 2147483647, %v1468_v21  ;;  %v148_v55 = vsub.f32 0.0, %v128_v37 }
  0x17   :  { %3152 = vst [vmem:[#allocation19_spill] sm:$0xff] %v1487_v40  ;;  %v165_v52 = vmul.f32 1.442695, %v143_v34  ;;  %v133_v54 = vand.u32 2147483647, %v1472_v25  ;;  %v1497_v57 = vld [vmem:[#allocation2 + $0x80] sm:$0xff]  ;;  %1067 = vpow2.f32 %v161_v44 }
  0x18   :  { %v167_v56 = vmul.f32 1.442695, %v144_v39  ;;  %3153 = vst [vmem:[#allocation20_spill] sm:$0xff] %v1497_v57  ;;  %v134_v58 = vand.u32 2147483647, %v1477_v30  ;;  %v149_v59 = vsub.f32 0.0, %v129_v38  ;;  %1069 = vpow2.f32 %v163_v48 }
  0x19   :  { %v169_v60 = vmul.f32 1.442695, %v145_v43  ;;  %v1500_v61 = vld [vmem:[#allocation2 + $0x88] sm:$0xff]  ;;  %v135_v62 = vand.u32 2147483647, %v1482_v35  ;;  %v150_v63 = vsub.f32 0.0, %v130_v42  ;;  %1071 = vpow2.f32 %v165_v52 }
  0x1a   :  { %3154 = vst [vmem:[#allocation21_spill] sm:$0xff] %v1500_v61  ;;  %v171_v4 = vmul.f32 1.442695, %v146_v47  ;;  %v1503_v9 = vld [vmem:[#allocation2 + $0x90] sm:$0xff]  ;;  %v136_v14 = vand.u32 2147483647, %v1487_v40  ;;  %1073 = vpow2.f32 %v167_v56 }
  0x1b   :  { %3155 = vst [vmem:[#allocation22_spill] sm:$0xff] %v1503_v9  ;;  %v151_v19 = vsub.f32 0.0, %v131_v46  ;;  %v173_v23 = vmul.f32 1.442695, %v147_v51  ;;  %v1506_v24 = vld [vmem:[#allocation2 + $0x98] sm:$0xff]  ;;  %v152_v29 = vsub.f32 0.0, %v132_v50  ;;  %1075 = vpow2.f32 %v169_v60 }
  0x1c   :  { %3156 = vst [vmem:[#allocation23_spill] sm:$0xff] %v1506_v24  ;;  %v137_v28 = vand.u32 2147483647, %v1497_v57  ;;  %v175_v33 = vmul.f32 1.442695, %v148_v55  ;;  %v153_v37 = vsub.f32 0.0, %v133_v54  ;;  %1077 = vpow2.f32 %v171_v4 }
  0x1d   :  { %v138_v34 = vand.u32 2147483647, %v1500_v61  ;;  %v177_v38 = vmul.f32 1.442695, %v149_v59  ;;  %v139_v39 = vand.u32 2147483647, %v1503_v9  ;;  %v1511_v44 = vpop.eup %1067  ;;  %1079 = vpow2.f32 %v173_v23 }
  0x1e   :  { %v154_v42 = vsub.f32 0.0, %v134_v58  ;;  %v179_v43 = vmul.f32 1.442695, %v150_v63  ;;  %v140_v46 = vand.u32 2147483647, %v1506_v24  ;;  %v155_v47 = vsub.f32 0.0, %v135_v62  ;;  %v1514_v50 = vpop.eup %1069 }
  0x1f   :  { %v181_v48 = vmul.f32 1.442695, %v151_v19  ;;  %v156_v52 = vsub.f32 0.0, %v136_v14  ;;  %1081 = vpow2.f32 %v175_v33  ;;  %v183_v54 = vmul.f32 1.442695, %v152_v29  ;;  %v1517_v55 = vpop.eup %1071  ;;  %v3239_v7 = vld [vmem:[#allocation12_spill] sm:$0xff] }
  0x20   :  { %v157_v56 = vsub.f32 0.0, %v137_v28  ;;  %v158_v58 = vsub.f32 0.0, %v138_v34  ;;  %1083 = vpow2.f32 %v177_v38  ;;  %v185_v59 = vmul.f32 1.442695, %v153_v37  ;;  %v1519_v60 = vpop.eup %1073 }
  0x21   :  { %v159_v63 = vsub.f32 0.0, %v139_v39  ;;  %1085 = vpow2.f32 %v179_v43  ;;  %v187_v62 = vmul.f32 1.442695, %v154_v42  ;;  %v204_v4 = vmul.f32 -0.5, %v1511_v44  ;;  %v1522_v19 = vpop.eup %1075 }
  0x22   :  { %v160_v23 = vsub.f32 0.0, %v140_v46  ;;  %1087 = vpow2.f32 %v181_v48  ;;  %v189_v14 = vmul.f32 1.442695, %v155_v47  ;;  %v213_v29 = vmul.f32 -0.5, %v1514_v50  ;;  %v1525_v33 = vpop.eup %1077 }
  0x23   :  { %1089 = vpow2.f32 %v183_v54  ;;  %v191_v37 = vmul.f32 1.442695, %v156_v52  ;;  %v1529_v38 = vpop.eup %1079  ;;  %v193_v42 = vmul.f32 1.442695, %v157_v56  ;;  %v195_v43 = vmul.f32 1.442695, %v158_v58 }
  0x24   :  { %1091 = vpow2.f32 %v185_v59  ;;  %v197_v47 = vmul.f32 1.442695, %v159_v63  ;;  %v205_v48 = vadd.f32 1.0, %v204_v4  ;;  %v222_v51 = vmul.f32 -0.5, %v1517_v55 }
  0x25   :  { %v1532_v46 = vpop.eup %1081  ;;  %1093 = vpow2.f32 %v187_v62  ;;  %v199_v34 = vmul.f32 1.442695, %v160_v23  ;;  %v214_v54 = vadd.f32 1.0, %v213_v29  ;;  %v231_v52 = vmul.f32 -0.5, %v1519_v60 }
  0x26   :  { %v1535_v53 = vpop.eup %1083  ;;  %1095 = vpow2.f32 %v189_v14  ;;  %v201_v56 = vadd.f32 1.0, %v1511_v44  ;;  %v207_v58 = vand.u32 2147483647, %v1511_v44  ;;  %v210_v59 = vadd.f32 1.0, %v1514_v50 }
  0x27   :  { %v1538_v28 = vpop.eup %1085  ;;  %1097 = vpow2.f32 %v191_v37  ;;  %v216_v62 = vand.u32 2147483647, %v1514_v50  ;;  %v219_v4 = vadd.f32 1.0, %v1517_v55  ;;  %v240_v23 = vmul.f32 -0.5, %v1522_v19 }
  0x28   :  { %v1543_v63 = vpop.eup %1087  ;;  %1099 = vpow2.f32 %v193_v42  ;;  %v1551_v29 = vmul.f32 %v1511_v44, %v205_v48  ;;  %v223_v37 = vadd.f32 1.0, %v222_v51  ;;  %v225_v39 = vand.u32 2147483647, %v1517_v55 }
  0x29   :  { %v1548_v14 = vpop.eup %1089  ;;  %1101 = vpow2.f32 %v195_v43  ;;  %v1557_v42 = vmul.f32 %v1514_v50, %v214_v54  ;;  %v228_v45 = vadd.f32 1.0, %v1519_v60  ;;  %v232_v41 = vadd.f32 1.0, %v231_v52 }
  0x2a   :  { %v1554_v49 = vpop.eup %1091  ;;  %1103 = vpow2.f32 %v197_v47  ;;  %v234_v43 = vand.u32 2147483647, %v1519_v60  ;;  %v237_v44 = vadd.f32 1.0, %v1522_v19  ;;  %v249_v51 = vmul.f32 -0.5, %v1525_v33 }
  0x2b   :  { %v1560_v36 = vpop.eup %1093  ;;  %1105 = vlog2.f32 %v201_v56  ;;  %v241_v32 = vadd.f32 1.0, %v240_v23  ;;  %v246_v47 = vadd.f32 1.0, %v1525_v33  ;;  %v258_v50 = vmul.f32 -0.5, %v1529_v38 }
  0x2c   :  { %v1565_v48 = vpop.eup %1095  ;;  %1107 = vlog2.f32 %v210_v59  ;;  %v1572_v52 = vmul.f32 %v1517_v55, %v223_v37  ;;  %v243_v56 = vand.u32 2147483647, %v1522_v19  ;;  %v255_v31 = vadd.f32 1.0, %v1529_v38 }
  0x2d   :  { %v1569_v54 = vpop.eup %1097  ;;  %1109 = vlog2.f32 %v219_v4  ;;  %v1579_v59 = vmul.f32 %v1519_v60, %v232_v41  ;;  %v252_v23 = vand.u32 2147483647, %v1525_v33  ;;  %v267_v26 = vmul.f32 -0.5, %v1532_v46 }
  0x2e   :  { %v1576_v27 = vpop.eup %1099  ;;  %1111 = vlog2.f32 %v228_v45  ;;  %vm1585_vm0 = vcmp.lt.f32.partialorder %v207_v58, 0.0004427343  ;;  %v250_v55 = vadd.f32 1.0, %v249_v51  ;;  %v261_v37 = vand.u32 2147483647, %v1529_v38 }
  0x2f   :  { %v1583_v22 = vpop.eup %1101  ;;  %1113 = vlog2.f32 %v237_v44  ;;  %v264_v18 = vadd.f32 1.0, %v1532_v46  ;;  %vm1593_vm1 = vcmp.lt.f32.partialorder %v216_v62, 0.0004427343  ;;  %v1598_v60 = vmul.f32 %v1522_v19, %v241_v32 }
  0x30   :  { %v1591_v45 = vpop.eup %1103  ;;  %1115 = vlog2.f32 %v246_v47  ;;  %v259_v58 = vadd.f32 1.0, %v258_v50  ;;  %v276_v17 = vmul.f32 -0.5, %v1535_v53  ;;  %vm1601_vm2 = vcmp.lt.f32.partialorder %v225_v39, 0.0004427343  ;;  %v3232_v39 = vld [vmem:[#allocation11_spill] sm:$0xff] }
  0x31   :  { %v1106_v16 = vpop.eup %1105  ;;  %vm1605_vm3 = vcmp.lt.f32.partialorder %v234_v43, 0.0004427343  ;;  %1117 = vlog2.f32 %v255_v31  ;;  %v270_v62 = vand.u32 2147483647, %v1532_v46  ;;  %v273_v13 = vadd.f32 1.0, %v1535_v53 }
  0x32   :  { %v285_v32 = vmul.f32 -0.5, %v1538_v28  ;;  %v1108_v19 = vpop.eup %1107  ;;  %1119 = vpow2.f32 %v199_v34  ;;  %vm1612_vm4 = vcmp.lt.f32.partialorder %v243_v56, 0.0004427343  ;;  %vm1616_vm5 = vcmp.lt.f32.partialorder %v252_v23, 0.0004427343 }
  0x33   :  { %v268_v43 = vadd.f32 1.0, %v267_v26  ;;  %v282_v50 = vadd.f32 1.0, %v1538_v28  ;;  %v1110_v31 = vpop.eup %1109  ;;  %v1622_v8 = vmul.f32 %v1525_v33, %v250_v55  ;;  %vm1624_vm6 = vcmp.lt.f32.partialorder %v261_v37, 0.0004427343 }
  0x34   :  { %1121 = vlog2.f32 %v264_v18  ;;  %v294_v34 = vmul.f32 -0.5, %v1543_v63  ;;  %v1112_v56 = vpop.eup %1111  ;;  %v1630_v23 = vmul.f32 %v1529_v38, %v259_v58  ;;  %v277_v24 = vadd.f32 1.0, %v276_v17 }
  0x35   :  { %v279_v26 = vand.u32 2147483647, %v1535_v53  ;;  %v291_v9 = vadd.f32 1.0, %v1543_v63  ;;  %v1114_v61 = vpop.eup %1113  ;;  %vm1634_vm7 = vcmp.lt.f32.partialorder %v270_v62, 0.0004427343  ;;  %v3171_v33 = vmov 0 }
  0x36   :  { %v3172_v33 = vsel %vm1634_vm7, 4294967295, %v3171_v33  ;;  %1123 = vlog2.f32 %v273_v13  ;;  %v286_v55 = vadd.f32 1.0, %v285_v32  ;;  %v288_v18 = vand.u32 2147483647, %v1538_v28  ;;  %v1116_v37 = vpop.eup %1115 }
  0x37   :  { %3173 = vst [vmem:[#allocation24_spill] sm:$0xff] %v3172_v33  ;;  %v1639_v57 = vmul.f32 0.6931472, %v1106_v16  ;;  %v1642_v38 = vmul.f32 %v1532_v46, %v268_v43  ;;  %1125 = vlog2.f32 %v282_v50  ;;  %v297_v17 = vand.u32 2147483647, %v1543_v63  ;;  %v1118_v58 = vpop.eup %1117 }
  0x38   :  { %v1645_v40 = vmul.f32 0.6931472, %v1108_v19  ;;  %v295_v62 = vadd.f32 1.0, %v294_v34  ;;  %v300_v35 = vadd.f32 1.0, %v1548_v14  ;;  %v303_v13 = vmul.f32 -0.5, %v1548_v14  ;;  %v1649_v32 = vpop.eup %1119 }
  0x39   :  { %3174 = vst [vmem:[#allocation25_spill] sm:$0xff] %v1642_v38  ;;  %v1651_v30 = vmul.f32 0.6931472, %v1110_v31  ;;  %v1653_v16 = vmul.f32 0.6931472, %v1112_v56  ;;  %v1656_v46 = vmul.f32 %v1535_v53, %v277_v24  ;;  %v3176_v43 = vmov 0 }
  0x3a   :  { %vm1658_vm8 = vcmp.lt.f32.partialorder %v279_v26, 0.0004427343  ;;  %1127 = vlog2.f32 %v291_v9  ;;  %v1122_v19 = vpop.eup %1121  ;;  %v1662_v50 = vmul.f32 0.6931472, %v1114_v61  ;;  %v1664_v34 = vmul.f32 0.6931472, %v1116_v37 }
  0x3b   :  { %3175 = vst [vmem:[#allocation26_spill] sm:$0xff] %v1656_v46  ;;  %v3177_v43 = vsel %vm1658_vm8, 4294967295, %v3176_v43  ;;  %v1667_v25 = vmul.f32 %v1538_v28, %v286_v55  ;;  %vm1669_vm9 = vcmp.lt.f32.partialorder %v288_v18, 0.0004427343  ;;  %v3180_v31 = vmov 0 }
  0x3c   :  { %3178 = vst [vmem:[#allocation27_spill] sm:$0xff] %v3177_v43  ;;  %v3181_v31 = vsel %vm1669_vm9, 4294967295, %v3180_v31  ;;  %v1677_v24 = vmul.f32 0.6931472, %v1118_v58  ;;  %vm1679_vm10 = vcmp.lt.f32.partialorder %v297_v17, 0.0004427343  ;;  %v1124_v56 = vpop.eup %1123  ;;  %v1690_v55 = vmul.f32 %v1543_v63, %v295_v62 }
  0x3d   :  { %3179 = vst [vmem:[#allocation28_spill] sm:$0xff] %v1667_v25  ;;  %v3184_v9 = vmov 0  ;;  %v306_v61 = vand.u32 2147483647, %v1548_v14  ;;  %v309_v28 = vadd.f32 1.0, %v1554_v49  ;;  %1129 = vlog2.f32 %v300_v35  ;;  %v1126_v37 = vpop.eup %1125 }
  0x3e   :  { %3182 = vst [vmem:[#allocation29_spill] sm:$0xff] %v3181_v31  ;;  %v3185_v9 = vsel %vm1679_vm10, 4294967295, %v3184_v9  ;;  %v304_v18 = vadd.f32 1.0, %v303_v13  ;;  %v1700_v53 = vmul.f32 0.6931472, %v1122_v19  ;;  %v318_v26 = vadd.f32 1.0, %v1560_v36 }
  0x3f   :  { %3183 = vst [vmem:[#allocation30_spill] sm:$0xff] %v1677_v24  ;;  %v312_v62 = vmul.f32 -0.5, %v1554_v49  ;;  %v327_v13 = vadd.f32 1.0, %v1565_v48  ;;  %vm1717_vm11 = vcmp.lt.f32.partialorder %v306_v61, 0.0004427343  ;;  %1131 = vlog2.f32 %v309_v28 }
  0x40   :  { %3186 = vst [vmem:[#allocation31_spill] sm:$0xff] %v3185_v9  ;;  %v1128_v17 = vpop.eup %1127  ;;  %v336_v35 = vadd.f32 1.0, %v1569_v54  ;;  %v1722_v21 = vmul.f32 0.6931472, %v1124_v56  ;;  %v1724_v63 = vmul.f32 0.6931472, %v1126_v37  ;;  %v1727_v20 = vmul.f32 %v1548_v14, %v304_v18 }
  0x41   :  { %3187 = vst [vmem:[#allocation32_spill] sm:$0xff] %v1690_v55  ;;  %v315_v15 = vand.u32 2147483647, %v1554_v49  ;;  %1133 = vlog2.f32 %v318_v26  ;;  %v321_v19 = vmul.f32 -0.5, %v1560_v36  ;;  %v345_v28 = vadd.f32 1.0, %v1576_v27 }
  0x42   :  { %3188 = vst [vmem:[#allocation33_spill] sm:$0xff] %v1700_v53  ;;  %v1736_v56 = vmul.f32 0.6931472, %v1128_v17  ;;  %v313_v37 = vadd.f32 1.0, %v312_v62  ;;  %1135 = vlog2.f32 %v327_v13  ;;  %v354_v14 = vadd.f32 1.0, %v1583_v22 }
  0x43   :  { %3191 = vst [vmem:[#allocation34_spill] sm:$0xff] %v1722_v21  ;;  %v1130_v12 = vpop.eup %1129  ;;  %v324_v18 = vand.u32 2147483647, %v1560_v36  ;;  %v330_v11 = vmul.f32 -0.5, %v1565_v48  ;;  %1137 = vlog2.f32 %v336_v35  ;;  %v363_v33 = vadd.f32 1.0, %v1591_v45 }
  0x44   :  { %3192 = vst [vmem:[#allocation35_spill] sm:$0xff] %v1724_v63  ;;  %vm1750_vm12 = vcmp.lt.f32.partialorder %v315_v15, 0.0004427343  ;;  %v339_v13 = vmul.f32 -0.5, %v1569_v54  ;;  %v1755_v35 = vmul.f32 0.6931472, %v1130_v12  ;;  %1139 = vlog2.f32 %v345_v28 }
  0x45   :  { %3193 = vst [vmem:[#allocation36_spill] sm:$0xff] %v1736_v56  ;;  %v1132_v61 = vpop.eup %1131  ;;  %v322_v53 = vadd.f32 1.0, %v321_v19  ;;  %v372_v38 = vadd.f32 1.0, %v1649_v32  ;;  %v1763_v17 = vmul.f32 %v1554_v49, %v313_v37  ;;  %v348_v15 = vmul.f32 -0.5, %v1576_v27 }
  0x46   :  { %1141 = vlog2.f32 %v354_v14  ;;  %vm1766_vm13 = vcmp.lt.f32.partialorder %v324_v18, 0.0004427343  ;;  %v331_v12 = vadd.f32 1.0, %v330_v11  ;;  %v357_v19 = vmul.f32 -0.5, %v1583_v22 }
  0x47   :  { %v1134_v63 = vpop.eup %1133  ;;  %1143 = vlog2.f32 %v363_v33  ;;  %v311_v31 = vmul.f32 0.6931472, %v1132_v61  ;;  %v333_v9 = vand.u32 2147483647, %v1565_v48  ;;  %v340_v26 = vadd.f32 1.0, %v339_v13 }
  0x48   :  { %v1136_v28 = vpop.eup %1135  ;;  %v366_v49 = vmul.f32 -0.5, %v1591_v45  ;;  %v308_v14 = vsel %vm1717_vm11, %v1727_v20, %v1755_v35  ;;  %v323_v18 = vmul.f32 %v1560_v36, %v322_v53  ;;  %v342_v11 = vand.u32 2147483647, %v1569_v54 }
  0x49   :  { %v1138_v37 = vpop.eup %1137  ;;  %1145 = vlog2.f32 %v372_v38  ;;  %v320_v56 = vmul.f32 0.6931472, %v1134_v63  ;;  %v349_v33 = vadd.f32 1.0, %v348_v15  ;;  %v351_v61 = vand.u32 2147483647, %v1576_v27  ;;  %v3249_v15 = vld [vmem:[#allocation28_spill] sm:$0xff] }
  0x4a   :  { %v375_v55 = vmul.f32 -0.5, %v1649_v32  ;;  %v1140_v13 = vpop.eup %1139  ;;  %v329_v21 = vmul.f32 0.6931472, %v1136_v28  ;;  %v332_v46 = vmul.f32 %v1565_v48, %v331_v12  ;;  %v358_v43 = vadd.f32 1.0, %v357_v19 }
  0x4b   :  { %v360_v24 = vand.u32 2147483647, %v1583_v22  ;;  %vm1783_vm14 = vcmp.lt.f32.partialorder %v333_v9, 0.0004427343  ;;  %v338_v36 = vmul.f32 0.6931472, %v1138_v37  ;;  %v341_v38 = vmul.f32 %v1569_v54, %v340_v26 }
  0x4c   :  { %v1142_v58 = vpop.eup %1141  ;;  %v367_v53 = vadd.f32 1.0, %v366_v49  ;;  %v317_v35 = vsel %vm1750_vm12, %v1763_v17, %v311_v31  ;;  %vm1791_vm15 = vcmp.lt.f32.partialorder %v342_v11, 0.0004427343  ;;  %v369_v48 = vand.u32 2147483647, %v1591_v45 }
  0x4d   :  { %v1144_v63 = vpop.eup %1143  ;;  %v378_v9 = vand.u32 2147483647, %v1649_v32  ;;  %v347_v12 = vmul.f32 0.6931472, %v1140_v13  ;;  %v350_v19 = vmul.f32 %v1576_v27, %v349_v33  ;;  %vm1798_vm11 = vcmp.lt.f32.partialorder %v351_v61, 0.0004427343 }
  0x4e   :  { %v376_v54 = vadd.f32 1.0, %v375_v55  ;;  %v326_v31 = vsel %vm1766_vm13, %v323_v18, %v320_v56  ;;  %v335_v17 = vsel %vm1783_vm14, %v332_v46, %v329_v21  ;;  %v359_v62 = vmul.f32 %v1583_v22, %v358_v43  ;;  %v3242_v13 = vld [vmem:[#allocation26_spill] sm:$0xff] }
  0x4f   :  { %v1146_v26 = vpop.eup %1145  ;;  %vm1807_vm12 = vcmp.lt.f32.partialorder %v360_v24, 0.0004427343  ;;  %v344_v27 = vsel %vm1791_vm15, %v341_v38, %v338_v36  ;;  %v356_v37 = vmul.f32 0.6931472, %v1142_v58  ;;  %v365_v11 = vmul.f32 0.6931472, %v1144_v63 }
  0x50   :  { %v368_v55 = vmul.f32 %v1591_v45, %v367_v53  ;;  %vm1814_vm10 = vcmp.lt.f32.partialorder %v369_v48, 0.0004427343  ;;  %vm1818_vm13 = vcmp.lt.f32.partialorder %v378_v9, 0.0004427343  ;;  %v3210_v21 = vmax.f32 %v1436_v0, 0.0  ;;  %v3243_v58 = vld [vmem:[#allocation34_spill] sm:$0xff] }
  0x51   :  { %v3211_v22 = vsel %vm1585_vm0, %v1551_v29, %v1639_v57  ;;  %v3213_v43 = vmax.f32 %v1438_v1, 0.0  ;;  %v3214_v45 = vsel %vm1593_vm1, %v1557_v42, %v1645_v40  ;;  %v353_v56 = vsel %vm1798_vm11, %v350_v19, %v347_v12  ;;  %v3246_v38 = vld [vmem:[#allocation13_spill] sm:$0xff]  ;;  %v3250_v48 = vld [vmem:[#allocation35_spill] sm:$0xff]  ;;  %v3253_v19 = vld [vmem:[#allocation14_spill] sm:$0xff] }
  0x52   :  { %v1829_v46 = vadd.f32 %v3211_v22, %v3210_v21  ;;  %v374_v0 = vmul.f32 0.6931472, %v1146_v26  ;;  %v377_v4 = vmul.f32 %v1649_v32, %v376_v54  ;;  %v3216_v18 = vmax.f32 %v1440_v2, 0.0  ;;  %v3255_v54 = vld [vmem:[#allocation31_spill] sm:$0xff]  ;;  %v3257_v26 = vld [vmem:[#allocation32_spill] sm:$0xff] }
  0x53   :  { %v1838_v24 = vadd.f32 %v3214_v45, %v3213_v43  ;;  %v3217_v1 = vsel %vm1601_vm2, %v1572_v52, %v1651_v30  ;;  %v3219_v29 = vmax.f32 %v1442_v3, 0.0  ;;  %v3220_v40 = vsel %vm1605_vm3, %v1579_v59, %v1653_v16  ;;  %v3235_v16 = vld [vmem:[#allocation25_spill] sm:$0xff]  ;;  %v3264_v21 = vld [vmem:[#allocation16_spill] sm:$0xff]  ;;  %v2029_v63 = vld [vmem:[#allocation5 + $0x68] sm:$0xff] }
  0x54   :  { %3212 = vst [vmem:[#allocation37_spill] sm:$0xff] %v1829_v46  ;;  %v1850_v57 = vadd.f32 %v3217_v1, %v3216_v18  ;;  %v3222_v41 = vmax.f32 %v1445_v5, 0.0  ;;  %v3223_v2 = vsel %vm1612_vm4, %v1598_v60, %v1662_v50  ;;  %v3225_v30 = vmax.f32 %v1447_v6, 0.0  ;;  %v3229_v5 = vld [vmem:[#allocation30_spill] sm:$0xff]  ;;  %v3236_v50 = vld [vmem:[#allocation33_spill] sm:$0xff] }
  0x55   :  { %3215 = vst [vmem:[#allocation38_spill] sm:$0xff] %v1838_v24  ;;  %v1859_v42 = vadd.f32 %v3220_v40, %v3219_v29  ;;  %v3226_v3 = vsel %vm1616_vm5, %v1622_v8, %v1664_v34  ;;  %v3228_v59 = vmax.f32 %v1452_v10, 0.0  ;;  %v3230_v51 = vsel %vm1624_vm6, %v1630_v23, %v3229_v5  ;;  %v3267_v18 = vld [vmem:[#allocation17_spill] sm:$0xff]  ;;  %v3270_v40 = vld [vmem:[#allocation18_spill] sm:$0xff]  ;;  %v2034_v23 = vld [vmem:[#allocation5 + $0x70] sm:$0xff] }
  0x56   :  { %3218 = vst [vmem:[#allocation39_spill] sm:$0xff] %v1850_v57  ;;  %v1868_v44 = vadd.f32 %v3223_v2, %v3222_v41  ;;  %v1877_v52 = vadd.f32 %v3226_v3, %v3225_v30  ;;  %v362_v60 = vsel %vm1807_vm12, %v359_v62, %v356_v37  ;;  %v371_v6 = vsel %vm1814_vm10, %v368_v55, %v365_v11  ;;  %v3258_v62 = vld [vmem:[#allocation36_spill] sm:$0xff]  ;;  %v3261_v11 = vld [vmem:[#allocation15_spill] sm:$0xff] }
  0x57   :  { %3221 = vst [vmem:[#allocation40_spill] sm:$0xff] %v1859_v42  ;;  %v1886_v47 = vadd.f32 %v3230_v51, %v3228_v59  ;;  %v3233_v32 = vmax.f32 %v3232_v39, 0.0  ;;  %v3237_v10 = vsel %vm1634_vm7, %v3235_v16, %v3236_v50  ;;  %v3240_v61 = vmax.f32 %v3239_v7, 0.0  ;;  %v3273_v30 = vld [vmem:[#allocation19_spill] sm:$0xff] }
  0x58   :  { %3224 = vst [vmem:[#allocation41_spill] sm:$0xff] %v1868_v44  ;;  %v3244_v20 = vsel %vm1658_vm8, %v3242_v13, %v3243_v58  ;;  %v3247_v53 = vmax.f32 %v3246_v38, 0.0  ;;  %v3251_v9 = vsel %vm1669_vm9, %v3249_v15, %v3250_v48  ;;  %v3254_v28 = vmax.f32 %v3253_v19, 0.0  ;;  %v1969_v50 = vld [vmem:[#allocation5 + $0x8] sm:$0xff]  ;;  %v1980_v58 = vld [vmem:[#allocation5 + $0x18] sm:$0xff] }
  0x59   :  { %3227 = vst [vmem:[#allocation42_spill] sm:$0xff] %v1877_v52  ;;  %v1899_v34 = vadd.f32 %v3237_v10, %v3233_v32  ;;  %v1908_v36 = vadd.f32 %v3244_v20, %v3240_v61  ;;  %vm3256_vm0 = vnez %v3255_v54  ;;  %v3262_v55 = vmax.f32 %v3261_v11, 0.0  ;;  %v3285_v10 = vld [vmem:[#allocation23_spill] sm:$0xff]  ;;  %v1982_v20 = vld [vmem:[#allocation5 + $0x20] sm:$0xff] }
  0x5a   :  { %3231 = vst [vmem:[#allocation30_spill] sm:$0xff] %v1886_v47  ;;  %v1917_v12 = vadd.f32 %v3251_v9, %v3247_v53  ;;  %v3259_v49 = vsel %vm3256_vm0, %v3257_v26, %v3258_v62  ;;  %v3265_v22 = vmax.f32 %v3264_v21, 0.0  ;;  %v380_v45 = vsel %vm1818_vm13, %v377_v4, %v374_v0  ;;  %v3282_v0 = vld [vmem:[#allocation22_spill] sm:$0xff]  ;;  %v1988_v48 = vld [vmem:[#allocation5 + $0x28] sm:$0xff]  ;;  %v1994_v26 = vld [vmem:[#allocation5 + $0x30] sm:$0xff] }
  0x5b   :  { %3238 = vst [vmem:[#allocation11_spill] sm:$0xff] %v1899_v34  ;;  %v1926_v37 = vadd.f32 %v3259_v49, %v3254_v28  ;;  %v1930_v33 = vadd.f32 %v308_v14, %v3262_v55  ;;  %v3268_v1 = vmax.f32 %v3267_v18, 0.0  ;;  %v3271_v41 = vmax.f32 %v3270_v40, 0.0  ;;  %v3276_v14 = vld [vmem:[#allocation20_spill] sm:$0xff]  ;;  %v2000_v21 = vld [vmem:[#allocation5 + $0x38] sm:$0xff]  ;;  %v2024_v62 = vld [vmem:[#allocation5 + $0x60] sm:$0xff] }
  0x5c   :  { %3245 = vst [vmem:[#allocation24_spill] sm:$0xff] %v1908_v36  ;;  %v1934_v43 = vadd.f32 %v317_v35, %v3265_v22  ;;  %v3274_v3 = vmax.f32 %v3273_v30, 0.0  ;;  %v3277_v5 = vmax.f32 %v3276_v14, 0.0  ;;  %v3279_v35 = vld [vmem:[#allocation21_spill] sm:$0xff]  ;;  %v3283_v4 = vmax.f32 %v3282_v0, 0.0  ;;  %v2002_v22 = vld [vmem:[#allocation5 + $0x40] sm:$0xff] }
  0x5d   :  { %3252 = vst [vmem:[#allocation25_spill] sm:$0xff] %v1917_v12  ;;  %v1940_v29 = vadd.f32 %v326_v31, %v3268_v1  ;;  %v1944_v2 = vadd.f32 %v335_v17, %v3271_v41  ;;  %v3280_v39 = vmax.f32 %v3279_v35, 0.0  ;;  %v1963_v17 = vld [vmem:[#allocation5] sm:$0xff]  ;;  %v3286_v7 = vmax.f32 %v3285_v10, 0.0  ;;  %v2008_v41 = vld [vmem:[#allocation5 + $0x48] sm:$0xff]  ;;  %v2014_v35 = vld [vmem:[#allocation5 + $0x50] sm:$0xff] }
  0x5e   :  { %3260 = vst [vmem:[#allocation33_spill] sm:$0xff] %v1926_v37  ;;  %v1948_v59 = vadd.f32 %v344_v27, %v3274_v3  ;;  %v1952_v51 = vadd.f32 %v353_v56, %v3277_v5  ;;  %v1960_v31 = vadd.f32 %v371_v6, %v3283_v4  ;;  %v441_v54 = vand.u32 2147483647, %v1963_v17  ;;  %v2038_v27 = vld [vmem:[#allocation5 + $0x78] sm:$0xff]  ;;  %v2046_v0 = vld [vmem:[#allocation5 + $0x80] sm:$0xff] }
  0x5f   :  { %3263 = vst [vmem:[#allocation12_spill] sm:$0xff] %v1930_v33  ;;  %v1956_v25 = vadd.f32 %v362_v60, %v3280_v39  ;;  %v1971_v60 = vld [vmem:[#allocation5 + $0x10] sm:$0xff]  ;;  %v1975_v6 = vadd.f32 %v380_v45, %v3286_v7  ;;  %v442_v55 = vand.u32 2147483647, %v1969_v50  ;;  %v444_v5 = vand.u32 2147483647, %v1980_v58 }
  0x60   :  { %3266 = vst [vmem:[#allocation27_spill] sm:$0xff] %v1934_v43  ;;  %v443_v40 = vand.u32 2147483647, %v1971_v60  ;;  %v445_v4 = vand.u32 2147483647, %v1982_v20  ;;  %v461_v10 = vsub.f32 0.0, %v441_v54 }
  0x61   :  { %3269 = vst [vmem:[#allocation26_spill] sm:$0xff] %v1940_v29  ;;  %v2019_v7 = vld [vmem:[#allocation5 + $0x58] sm:$0xff]  ;;  %v446_v11 = vand.u32 2147483647, %v1988_v48  ;;  %v462_v49 = vsub.f32 0.0, %v442_v55  ;;  %v464_v13 = vsub.f32 0.0, %v444_v5 }
  0x62   :  { %3272 = vst [vmem:[#allocation34_spill] sm:$0xff] %v1944_v2  ;;  %v447_v9 = vand.u32 2147483647, %v1994_v26  ;;  %v463_v15 = vsub.f32 0.0, %v443_v40  ;;  %v448_v53 = vand.u32 2147483647, %v2000_v21 }
  0x63   :  { %3275 = vst [vmem:[#allocation13_spill] sm:$0xff] %v1948_v59  ;;  %v449_v38 = vand.u32 2147483647, %v2002_v22  ;;  %v450_v61 = vand.u32 2147483647, %v2008_v41  ;;  %v465_v56 = vsub.f32 0.0, %v445_v4 }
  0x64   :  { %3278 = vst [vmem:[#allocation29_spill] sm:$0xff] %v1952_v51  ;;  %v481_v16 = vmul.f32 1.442695, %v461_v10  ;;  %v451_v8 = vand.u32 2147483647, %v2014_v35  ;;  %v466_v32 = vsub.f32 0.0, %v446_v11 }
  0x65   :  { %3281 = vst [vmem:[#allocation28_spill] sm:$0xff] %v1956_v25  ;;  %v483_v54 = vmul.f32 1.442695, %v462_v49  ;;  %v452_v5 = vand.u32 2147483647, %v2019_v7  ;;  %v467_v28 = vsub.f32 0.0, %v447_v9 }
  0x66   :  { %3284 = vst [vmem:[#allocation35_spill] sm:$0xff] %v1960_v31  ;;  %v485_v45 = vmul.f32 1.442695, %v463_v15  ;;  %v453_v18 = vand.u32 2147483647, %v2024_v62  ;;  %v468_v4 = vsub.f32 0.0, %v448_v53  ;;  %1147 = vpow2.f32 %v481_v16 }
  0x67   :  { %3287 = vst [vmem:[#allocation14_spill] sm:$0xff] %v1975_v6  ;;  %v487_v10 = vmul.f32 1.442695, %v464_v13  ;;  %v454_v40 = vand.u32 2147483647, %v2029_v63  ;;  %v469_v39 = vsub.f32 0.0, %v449_v38  ;;  %1149 = vpow2.f32 %v483_v54 }
  0x68   :  { %3288 = vst [vmem:[#allocation31_spill] sm:$0xff] %v2000_v21  ;;  %v489_v11 = vmul.f32 1.442695, %v465_v56  ;;  %v2049_v49 = vld [vmem:[#allocation5 + $0x88] sm:$0xff]  ;;  %v455_v19 = vand.u32 2147483647, %v2034_v23  ;;  %1151 = vpow2.f32 %v485_v45 }
  0x69   :  { %3289 = vst [vmem:[#allocation32_spill] sm:$0xff] %v2002_v22  ;;  %v470_v14 = vsub.f32 0.0, %v450_v61  ;;  %v491_v15 = vmul.f32 1.442695, %v466_v32  ;;  %v2052_v9 = vld [vmem:[#allocation5 + $0x90] sm:$0xff]  ;;  %v471_v53 = vsub.f32 0.0, %v451_v8  ;;  %1153 = vpow2.f32 %v487_v10 }
  0x6a   :  { %3290 = vst [vmem:[#allocation36_spill] sm:$0xff] %v2008_v41  ;;  %v456_v55 = vand.u32 2147483647, %v2038_v27  ;;  %v493_v13 = vmul.f32 1.442695, %v467_v28  ;;  %v2055_v3 = vld [vmem:[#allocation5 + $0x98] sm:$0xff]  ;;  %1155 = vpow2.f32 %v489_v11 }
  0x6b   :  { %3291 = vst [vmem:[#allocation15_spill] sm:$0xff] %v2014_v35  ;;  %v457_v38 = vand.u32 2147483647, %v2046_v0  ;;  %v472_v16 = vsub.f32 0.0, %v452_v5  ;;  %v495_v56 = vmul.f32 1.442695, %v468_v4  ;;  %1157 = vpow2.f32 %v491_v15 }
  0x6c   :  { %3292 = vst [vmem:[#allocation16_spill] sm:$0xff] %v2019_v7  ;;  %v458_v30 = vand.u32 2147483647, %v2049_v49  ;;  %v473_v1 = vsub.f32 0.0, %v453_v18  ;;  %v497_v61 = vmul.f32 1.442695, %v469_v39  ;;  %v2060_v8 = vpop.eup %1147  ;;  %1159 = vpow2.f32 %v493_v13 }
  0x6d   :  { %3293 = vst [vmem:[#allocation17_spill] sm:$0xff] %v2024_v62  ;;  %v459_v32 = vand.u32 2147483647, %v2052_v9  ;;  %v474_v54 = vsub.f32 0.0, %v454_v40  ;;  %v499_v6 = vmul.f32 1.442695, %v470_v14  ;;  %v2063_v5 = vpop.eup %1149  ;;  %1161 = vpow2.f32 %v495_v56 }
  0x6e   :  { %3294 = vst [vmem:[#allocation18_spill] sm:$0xff] %v2029_v63  ;;  %v460_v28 = vand.u32 2147483647, %v2055_v3  ;;  %v475_v45 = vsub.f32 0.0, %v455_v19  ;;  %v501_v31 = vmul.f32 1.442695, %v471_v53  ;;  %v2066_v39 = vpop.eup %1151  ;;  %1163 = vpow2.f32 %v497_v61 }
  0x6f   :  { %3295 = vst [vmem:[#allocation19_spill] sm:$0xff] %v2034_v23  ;;  %v476_v10 = vsub.f32 0.0, %v456_v55  ;;  %v503_v18 = vmul.f32 1.442695, %v472_v16  ;;  %v477_v11 = vsub.f32 0.0, %v457_v38  ;;  %v2069_v15 = vpop.eup %1153  ;;  %v478_v25 = vsub.f32 0.0, %v458_v30 }
  0x70   :  { %3296 = vst [vmem:[#allocation20_spill] sm:$0xff] %v2038_v27  ;;  %v505_v14 = vmul.f32 1.442695, %v473_v1  ;;  %1165 = vpow2.f32 %v499_v6  ;;  %v507_v19 = vmul.f32 1.442695, %v474_v54  ;;  %v524_v53 = vmul.f32 -0.5, %v2060_v8  ;;  %v2072_v13 = vpop.eup %1155 }
  0x71   :  { %3297 = vst [vmem:[#allocation21_spill] sm:$0xff] %v2046_v0  ;;  %v479_v4 = vsub.f32 0.0, %v459_v32  ;;  %v480_v55 = vsub.f32 0.0, %v460_v28  ;;  %1167 = vpow2.f32 %v501_v31  ;;  %v509_v16 = vmul.f32 1.442695, %v475_v45  ;;  %v2074_v56 = vpop.eup %1157 }
  0x72   :  { %3298 = vst [vmem:[#allocation22_spill] sm:$0xff] %v2049_v49  ;;  %1169 = vpow2.f32 %v503_v18  ;;  %v511_v38 = vmul.f32 1.442695, %v476_v10  ;;  %v533_v1 = vmul.f32 -0.5, %v2063_v5  ;;  %v2078_v61 = vpop.eup %1159  ;;  %v513_v54 = vmul.f32 1.442695, %v477_v11 }
  0x73   :  { %3299 = vst [vmem:[#allocation23_spill] sm:$0xff] %v2052_v9  ;;  %1171 = vpow2.f32 %v505_v14  ;;  %v2082_v32 = vpop.eup %1161  ;;  %v515_v31 = vmul.f32 1.442695, %v478_v25  ;;  %v525_v28 = vadd.f32 1.0, %v524_v53  ;;  %v542_v45 = vmul.f32 -0.5, %v2066_v39 }
  0x74   :  { %3300 = vst [vmem:[#allocation43_spill] sm:$0xff] %v2055_v3  ;;  %1173 = vpow2.f32 %v507_v19  ;;  %v2085_v40 = vpop.eup %1163  ;;  %v517_v10 = vmul.f32 1.442695, %v479_v4  ;;  %v519_v18 = vmul.f32 1.442695, %v480_v55  ;;  %v551_v51 = vmul.f32 -0.5, %v2069_v15 }
  0x75   :  { %1175 = vpow2.f32 %v509_v16  ;;  %v521_v14 = vadd.f32 1.0, %v2060_v8  ;;  %v527_v11 = vand.u32 2147483647, %v2060_v8  ;;  %v534_v30 = vadd.f32 1.0, %v533_v1 }
  0x76   :  { %v2088_v59 = vpop.eup %1165  ;;  %1177 = vpow2.f32 %v511_v38  ;;  %v530_v25 = vadd.f32 1.0, %v2063_v5  ;;  %v536_v53 = vand.u32 2147483647, %v2063_v5  ;;  %v560_v4 = vmul.f32 -0.5, %v2072_v13 }
  0x77   :  { %v2092_v19 = vpop.eup %1167  ;;  %1179 = vpow2.f32 %v513_v54  ;;  %v2100_v16 = vmul.f32 %v2060_v8, %v525_v28  ;;  %v539_v38 = vadd.f32 1.0, %v2066_v39  ;;  %v543_v6 = vadd.f32 1.0, %v542_v45 }
  0x78   :  { %v2097_v55 = vpop.eup %1169  ;;  %1181 = vpow2.f32 %v515_v31  ;;  %v545_v1 = vand.u32 2147483647, %v2066_v39  ;;  %v548_v54 = vadd.f32 1.0, %v2069_v15  ;;  %v552_v29 = vadd.f32 1.0, %v551_v51 }
  0x79   :  { %v2103_v2 = vpop.eup %1171  ;;  %1183 = vpow2.f32 %v517_v10  ;;  %v2110_v33 = vmul.f32 %v2063_v5, %v534_v30  ;;  %v557_v8 = vadd.f32 1.0, %v2072_v13  ;;  %v569_v31 = vmul.f32 -0.5, %v2074_v56 }
  0x7a   :  { %v2107_v43 = vpop.eup %1173  ;;  %1185 = vlog2.f32 %v521_v14  ;;  %v554_v45 = vand.u32 2147483647, %v2069_v15  ;;  %v561_v10 = vadd.f32 1.0, %v560_v4  ;;  %v566_v37 = vadd.f32 1.0, %v2074_v56 }
  0x7b   :  { %v2114_v28 = vpop.eup %1175  ;;  %1187 = vlog2.f32 %v530_v25  ;;  %v2121_v51 = vmul.f32 %v2066_v39, %v543_v6  ;;  %v563_v5 = vand.u32 2147483647, %v2072_v13  ;;  %v578_v30 = vmul.f32 -0.5, %v2078_v61 }
  0x7c   :  { %v2118_v12 = vpop.eup %1177  ;;  %1189 = vlog2.f32 %v539_v38  ;;  %v2128_v25 = vmul.f32 %v2069_v15, %v552_v29  ;;  %v575_v4 = vadd.f32 1.0, %v2078_v61  ;;  %v587_v36 = vmul.f32 -0.5, %v2082_v32 }
  0x7d   :  { %v2125_v14 = vpop.eup %1179  ;;  %1191 = vlog2.f32 %v548_v54  ;;  %vm2134_vm1 = vcmp.lt.f32.partialorder %v527_v11, 0.0004427343  ;;  %v570_v39 = vadd.f32 1.0, %v569_v31  ;;  %v572_v6 = vand.u32 2147483647, %v2074_v56 }
  0x7e   :  { %v2132_v34 = vpop.eup %1181  ;;  %1193 = vlog2.f32 %v557_v8  ;;  %v596_v47 = vmul.f32 -0.5, %v2085_v40  ;;  %vm2142_vm2 = vcmp.lt.f32.partialorder %v536_v53, 0.0004427343  ;;  %v2147_v15 = vmul.f32 %v2072_v13, %v561_v10 }
  0x7f   :  { %v2140_v54 = vpop.eup %1183  ;;  %1195 = vlog2.f32 %v566_v37  ;;  %v581_v11 = vand.u32 2147483647, %v2078_v61  ;;  %v584_v52 = vadd.f32 1.0, %v2082_v32  ;;  %vm2151_vm3 = vcmp.lt.f32.partialorder %v545_v1, 0.0004427343 }
  0x80   :  { %v1186_v8 = vpop.eup %1185  ;;  %1197 = vpow2.f32 %v519_v18  ;;  %vm2155_vm4 = vcmp.lt.f32.partialorder %v554_v45, 0.0004427343  ;;  %v579_v53 = vadd.f32 1.0, %v578_v30  ;;  %v593_v42 = vadd.f32 1.0, %v2085_v40  ;;  %v3368_v30 = vld [vmem:[#allocation31_spill] sm:$0xff] }
  0x81   :  { %v605_v13 = vmul.f32 -0.5, %v2088_v59  ;;  %v1188_v37 = vpop.eup %1187  ;;  %vm2161_vm5 = vcmp.lt.f32.partialorder %v563_v5, 0.0004427343  ;;  %1199 = vlog2.f32 %v575_v4  ;;  %v588_v18 = vadd.f32 1.0, %v587_v36 }
  0x82   :  { %v590_v1 = vand.u32 2147483647, %v2082_v32  ;;  %v602_v57 = vadd.f32 1.0, %v2088_v59  ;;  %v1190_v45 = vpop.eup %1189  ;;  %v2168_v24 = vmul.f32 %v2074_v56, %v570_v39  ;;  %vm2170_vm6 = vcmp.lt.f32.partialorder %v572_v6, 0.0004427343 }
  0x83   :  { %v597_v3 = vadd.f32 1.0, %v596_v47  ;;  %v614_v5 = vmul.f32 -0.5, %v2092_v19  ;;  %v1192_v46 = vpop.eup %1191  ;;  %vm2175_vm7 = vcmp.lt.f32.partialorder %v581_v11, 0.0004427343  ;;  %1201 = vlog2.f32 %v584_v52 }
  0x84   :  { %v599_v36 = vand.u32 2147483647, %v2085_v40  ;;  %v611_v4 = vadd.f32 1.0, %v2092_v19  ;;  %v1194_v49 = vpop.eup %1193  ;;  %v2182_v56 = vmul.f32 %v2078_v61, %v579_v53  ;;  %1203 = vlog2.f32 %v593_v42 }
  0x85   :  { %v606_v39 = vadd.f32 1.0, %v605_v13  ;;  %v608_v47 = vand.u32 2147483647, %v2088_v59  ;;  %v1196_v6 = vpop.eup %1195  ;;  %v2185_v0 = vmul.f32 0.6931472, %v1186_v8  ;;  %v2188_v11 = vmul.f32 %v2082_v32, %v588_v18 }
  0x86   :  { %vm2190_vm8 = vcmp.lt.f32.partialorder %v590_v1, 0.0004427343  ;;  %1205 = vlog2.f32 %v602_v57  ;;  %v617_v27 = vand.u32 2147483647, %v2092_v19  ;;  %v2195_v23 = vpop.eup %1197  ;;  %v2197_v61 = vmul.f32 0.6931472, %v1188_v37 }
  0x87   :  { %3315 = vst [vmem:[#allocation44_spill] sm:$0xff] %v2188_v11  ;;  %v2200_v42 = vmul.f32 %v2085_v40, %v597_v3  ;;  %v615_v53 = vadd.f32 1.0, %v614_v5  ;;  %v620_v8 = vadd.f32 1.0, %v2097_v55  ;;  %v1200_v13 = vpop.eup %1199  ;;  %v2203_v32 = vmul.f32 0.6931472, %v1190_v45 }
  0x88   :  { %v2205_v18 = vmul.f32 0.6931472, %v1192_v46  ;;  %vm2207_vm9 = vcmp.lt.f32.partialorder %v599_v36, 0.0004427343  ;;  %v3319_v1 = vmov 0  ;;  %1207 = vlog2.f32 %v611_v4 }
  0x89   :  { %3318 = vst [vmem:[#allocation45_spill] sm:$0xff] %v2200_v42  ;;  %v3320_v1 = vsel %vm2207_vm9, 4294967295, %v3319_v1  ;;  %v623_v57 = vmul.f32 -0.5, %v2097_v55  ;;  %v2212_v37 = vmul.f32 0.6931472, %v1194_v49  ;;  %v2217_v3 = vmul.f32 %v2088_v59, %v606_v39  ;;  %v1202_v46 = vpop.eup %1201 }
  0x8a   :  { %3321 = vst [vmem:[#allocation46_spill] sm:$0xff] %v3320_v1  ;;  %v2214_v63 = vmul.f32 0.6931472, %v1196_v6  ;;  %vm2219_vm10 = vcmp.lt.f32.partialorder %v608_v47, 0.0004427343  ;;  %v3323_v40 = vmov 0  ;;  %v1204_v59 = vpop.eup %1203  ;;  %v2240_v47 = vmul.f32 %v2092_v19, %v615_v53 }
  0x8b   :  { %3322 = vst [vmem:[#allocation47_spill] sm:$0xff] %v2217_v3  ;;  %v3324_v40 = vsel %vm2219_vm10, 4294967295, %v3323_v40  ;;  %vm2227_vm14 = vcmp.lt.f32.partialorder %v617_v27, 0.0004427343  ;;  %v3326_v5 = vmov 0  ;;  %v629_v36 = vadd.f32 1.0, %v2103_v2 }
  0x8c   :  { %3325 = vst [vmem:[#allocation48_spill] sm:$0xff] %v3324_v40  ;;  %v3327_v5 = vsel %vm2227_vm14, 4294967295, %v3326_v5  ;;  %v626_v49 = vand.u32 2147483647, %v2097_v55  ;;  %v2237_v39 = vmul.f32 0.6931472, %v1200_v13  ;;  %1209 = vlog2.f32 %v620_v8  ;;  %v1206_v27 = vpop.eup %1205 }
  0x8d   :  { %3328 = vst [vmem:[#allocation49_spill] sm:$0xff] %v3327_v5  ;;  %v624_v62 = vadd.f32 1.0, %v623_v57  ;;  %v638_v4 = vadd.f32 1.0, %v2107_v43  ;;  %v2259_v8 = vmul.f32 0.6931472, %v1202_v46  ;;  %v647_v13 = vadd.f32 1.0, %v2114_v28 }
  0x8e   :  { %3329 = vst [vmem:[#allocation50_spill] sm:$0xff] %v2237_v39  ;;  %v1208_v6 = vpop.eup %1207  ;;  %v2262_v7 = vmul.f32 0.6931472, %v1204_v59  ;;  %vm2264_vm15 = vcmp.lt.f32.partialorder %v626_v49, 0.0004427343  ;;  %1211 = vlog2.f32 %v629_v36  ;;  %v632_v45 = vmul.f32 -0.5, %v2103_v2 }
  0x8f   :  { %3330 = vst [vmem:[#allocation51_spill] sm:$0xff] %v2240_v47  ;;  %v2273_v53 = vmul.f32 0.6931472, %v1206_v27  ;;  %v635_v46 = vand.u32 2147483647, %v2103_v2  ;;  %v656_v35 = vadd.f32 1.0, %v2118_v12  ;;  %v2278_v59 = vmul.f32 %v2097_v55, %v624_v62 }
  0x90   :  { %3331 = vst [vmem:[#allocation52_spill] sm:$0xff] %v2259_v8  ;;  %1213 = vlog2.f32 %v638_v4  ;;  %v641_v49 = vmul.f32 -0.5, %v2107_v43  ;;  %v665_v36 = vadd.f32 1.0, %v2125_v14  ;;  %v2286_v27 = vmul.f32 0.6931472, %v1208_v6 }
  0x91   :  { %3332 = vst [vmem:[#allocation53_spill] sm:$0xff] %v2262_v7  ;;  %1215 = vlog2.f32 %v647_v13  ;;  %v674_v22 = vadd.f32 1.0, %v2132_v34  ;;  %v633_v21 = vadd.f32 1.0, %v632_v45  ;;  %v644_v62 = vand.u32 2147483647, %v2107_v43 }
  0x92   :  { %3335 = vst [vmem:[#allocation54_spill] sm:$0xff] %v2273_v53  ;;  %v1210_v41 = vpop.eup %1209  ;;  %v650_v55 = vmul.f32 -0.5, %v2114_v28  ;;  %v683_v4 = vadd.f32 1.0, %v2140_v54  ;;  %vm2300_vm11 = vcmp.lt.f32.partialorder %v635_v46, 0.0004427343  ;;  %1217 = vlog2.f32 %v656_v35 }
  0x93   :  { %3336 = vst [vmem:[#allocation55_spill] sm:$0xff] %v2286_v27  ;;  %v2304_v19 = vmul.f32 0.6931472, %v1210_v41  ;;  %v642_v8 = vadd.f32 1.0, %v641_v49  ;;  %v659_v11 = vmul.f32 -0.5, %v2118_v12  ;;  %1219 = vlog2.f32 %v665_v36 }
  0x94   :  { %v1212_v45 = vpop.eup %1211  ;;  %v668_v40 = vmul.f32 -0.5, %v2125_v14  ;;  %1221 = vlog2.f32 %v674_v22  ;;  %v692_v46 = vadd.f32 1.0, %v2195_v23  ;;  %v2314_v35 = vmul.f32 %v2103_v2, %v633_v21 }
  0x95   :  { %vm2316_vm12 = vcmp.lt.f32.partialorder %v644_v62, 0.0004427343  ;;  %v651_v49 = vadd.f32 1.0, %v650_v55  ;;  %1223 = vlog2.f32 %v683_v4  ;;  %v631_v53 = vmul.f32 0.6931472, %v1212_v45 }
  0x96   :  { %v1214_v6 = vpop.eup %1213  ;;  %v653_v5 = vand.u32 2147483647, %v2114_v28  ;;  %v677_v39 = vmul.f32 -0.5, %v2132_v34  ;;  %v686_v22 = vmul.f32 -0.5, %v2140_v54  ;;  %v628_v2 = vsel %vm2264_vm15, %v2278_v59, %v2304_v19  ;;  %v3392_v41 = vld [vmem:[#allocation51_spill] sm:$0xff] }
  0x97   :  { %v1216_v36 = vpop.eup %1215  ;;  %v643_v21 = vmul.f32 %v2107_v43, %v642_v8  ;;  %v660_v62 = vadd.f32 1.0, %v659_v11  ;;  %v662_v27 = vand.u32 2147483647, %v2118_v12  ;;  %v640_v4 = vmul.f32 0.6931472, %v1214_v6 }
  0x98   :  { %v1218_v55 = vpop.eup %1217  ;;  %v669_v47 = vadd.f32 1.0, %v668_v40  ;;  %v671_v45 = vand.u32 2147483647, %v2125_v14  ;;  %1225 = vlog2.f32 %v692_v46  ;;  %v649_v7 = vmul.f32 0.6931472, %v1216_v36  ;;  %v3377_v36 = vld [vmem:[#allocation45_spill] sm:$0xff] }
  0x99   :  { %v1220_v3 = vpop.eup %1219  ;;  %v652_v42 = vmul.f32 %v2114_v28, %v651_v49  ;;  %v680_v1 = vand.u32 2147483647, %v2132_v34  ;;  %v695_v57 = vmul.f32 -0.5, %v2195_v23  ;;  %v637_v43 = vsel %vm2300_vm11, %v2314_v35, %v631_v53  ;;  %v3378_v9 = vld [vmem:[#allocation53_spill] sm:$0xff]  ;;  %v3385_v52 = vld [vmem:[#allocation54_spill] sm:$0xff] }
  0x9a   :  { %v1222_v19 = vpop.eup %1221  ;;  %vm2336_vm13 = vcmp.lt.f32.partialorder %v653_v5, 0.0004427343  ;;  %v678_v40 = vadd.f32 1.0, %v677_v39  ;;  %v687_v8 = vadd.f32 1.0, %v686_v22  ;;  %v658_v6 = vmul.f32 0.6931472, %v1218_v55 }
  0x9b   :  { %v1224_v59 = vpop.eup %1223  ;;  %v661_v46 = vmul.f32 %v2118_v12, %v660_v62  ;;  %v689_v28 = vand.u32 2147483647, %v2140_v54  ;;  %v698_v49 = vand.u32 2147483647, %v2195_v23  ;;  %vm2343_vm0 = vcmp.lt.f32.partialorder %v662_v27, 0.0004427343 }
  0x9c   :  { %v667_v13 = vmul.f32 0.6931472, %v1220_v3  ;;  %v670_v5 = vmul.f32 %v2125_v14, %v669_v47  ;;  %vm2348_vm15 = vcmp.lt.f32.partialorder %v671_v45, 0.0004427343  ;;  %v646_v39 = vsel %vm2316_vm12, %v643_v21, %v640_v4 }
  0x9d   :  { %v655_v12 = vsel %vm2336_vm13, %v652_v42, %v649_v7  ;;  %vm2356_vm11 = vcmp.lt.f32.partialorder %v680_v1, 0.0004427343  ;;  %v696_v27 = vadd.f32 1.0, %v695_v57  ;;  %v676_v62 = vmul.f32 0.6931472, %v1222_v19  ;;  %v3436_v7 = vld [vmem:[#allocation41_spill] sm:$0xff] }
  0x9e   :  { %v1226_v22 = vpop.eup %1225  ;;  %v679_v3 = vmul.f32 %v2132_v34, %v678_v40  ;;  %v685_v14 = vmul.f32 0.6931472, %v1224_v59  ;;  %v688_v47 = vmul.f32 %v2140_v54, %v687_v8  ;;  %v664_v55 = vsel %vm2343_vm0, %v661_v46, %v658_v6  ;;  %v3374_v46 = vld [vmem:[#allocation32_spill] sm:$0xff] }
  0x9f   :  { %vm2364_vm14 = vcmp.lt.f32.partialorder %v689_v28, 0.0004427343  ;;  %vm2368_vm12 = vcmp.lt.f32.partialorder %v698_v49, 0.0004427343  ;;  %v3353_v42 = vmax.f32 %v1963_v17, 0.0  ;;  %v3354_v34 = vsel %vm2134_vm1, %v2100_v16, %v2185_v0 }
  0xa0   :  { %v673_v54 = vsel %vm2348_vm15, %v670_v5, %v667_v13  ;;  %v3355_v21 = vmax.f32 %v1969_v50, 0.0  ;;  %v3356_v4 = vsel %vm2142_vm2, %v2110_v33, %v2197_v61  ;;  %v3357_v57 = vmax.f32 %v1971_v60, 0.0 }
  0xa1   :  { %v2379_v1 = vadd.f32 %v3354_v34, %v3353_v42  ;;  %v3358_v0 = vsel %vm2151_vm3, %v2121_v51, %v2203_v32  ;;  %v3359_v38 = vmax.f32 %v1980_v58, 0.0  ;;  %v3360_v29 = vsel %vm2155_vm4, %v2128_v25, %v2205_v18  ;;  %v3393_v42 = vld [vmem:[#allocation55_spill] sm:$0xff] }
  0xa2   :  { %v2390_v45 = vadd.f32 %v3356_v4, %v3355_v21  ;;  %v2399_v16 = vadd.f32 %v3358_v0, %v3357_v57  ;;  %v694_v33 = vmul.f32 0.6931472, %v1226_v22  ;;  %v697_v61 = vmul.f32 %v2195_v23, %v696_v27  ;;  %v3384_v27 = vld [vmem:[#allocation47_spill] sm:$0xff]  ;;  %v3396_v4 = vld [vmem:[#allocation16_spill] sm:$0xff] }
  0xa3   :  { %v2408_v19 = vadd.f32 %v3360_v29, %v3359_v38  ;;  %v3361_v11 = vmax.f32 %v1982_v20, 0.0  ;;  %v3362_v51 = vsel %vm2161_vm5, %v2147_v15, %v2212_v37  ;;  %v3363_v32 = vmax.f32 %v1988_v48, 0.0  ;;  %v3366_v15 = vld [vmem:[#allocation50_spill] sm:$0xff]  ;;  %v3399_v38 = vld [vmem:[#allocation17_spill] sm:$0xff] }
  0xa4   :  { %v3364_v44 = vsel %vm2170_vm6, %v2168_v24, %v2214_v63  ;;  %v682_v23 = vsel %vm2356_vm11, %v679_v3, %v676_v62  ;;  %v691_v10 = vsel %vm2364_vm14, %v688_v47, %v685_v14  ;;  %v3365_v18 = vmax.f32 %v1994_v26, 0.0  ;;  %v3370_v24 = vld [vmem:[#allocation44_spill] sm:$0xff]  ;;  %v3388_v3 = vld [vmem:[#allocation15_spill] sm:$0xff]  ;;  %v3390_v47 = vld [vmem:[#allocation49_spill] sm:$0xff] }
  0xa5   :  { %v2418_v31 = vadd.f32 %v3362_v51, %v3361_v11  ;;  %v2427_v25 = vadd.f32 %v3364_v44, %v3363_v32  ;;  %v3367_v37 = vsel %vm2175_vm7, %v2182_v56, %v3366_v15  ;;  %v3369_v8 = vmax.f32 %v3368_v30, 0.0  ;;  %v3371_v63 = vld [vmem:[#allocation52_spill] sm:$0xff]  ;;  %v3402_v51 = vld [vmem:[#allocation18_spill] sm:$0xff] }
  0xa6   :  { %v2440_v40 = vadd.f32 %v3367_v37, %v3365_v18  ;;  %v3372_v59 = vsel %vm2190_vm8, %v3370_v24, %v3371_v63  ;;  %v3375_v28 = vmax.f32 %v3374_v46, 0.0  ;;  %v3379_v13 = vsel %vm2207_vm9, %v3377_v36, %v3378_v9  ;;  %v3381_v56 = vld [vmem:[#allocation36_spill] sm:$0xff]  ;;  %v3405_v18 = vld [vmem:[#allocation19_spill] sm:$0xff] }
  0xa7   :  { %v2449_v6 = vadd.f32 %v3372_v59, %v3369_v8  ;;  %v3382_v53 = vmax.f32 %v3381_v56, 0.0  ;;  %v3386_v22 = vsel %vm2219_vm10, %v3384_v27, %v3385_v52  ;;  %v3389_v14 = vmax.f32 %v3388_v3, 0.0  ;;  %v3408_v8 = vld [vmem:[#allocation20_spill] sm:$0xff]  ;;  %v3411_v59 = vld [vmem:[#allocation21_spill] sm:$0xff] }
  0xa8   :  { %v2458_v5 = vadd.f32 %v3379_v13, %v3375_v28  ;;  %vm3391_vm1 = vnez %v3390_v47  ;;  %v3397_v57 = vmax.f32 %v3396_v4, 0.0  ;;  %v3400_v29 = vmax.f32 %v3399_v38, 0.0  ;;  %v3421_v27 = vld [vmem:[#allocation37_spill] sm:$0xff] }
  0xa9   :  { %3373 = vst [vmem:[#allocation50_spill] sm:$0xff] %v2449_v6  ;;  %v2467_v62 = vadd.f32 %v3386_v22, %v3382_v53  ;;  %v3394_v34 = vsel %vm3391_vm1, %v3392_v41, %v3393_v42  ;;  %v3403_v32 = vmax.f32 %v3402_v51, 0.0  ;;  %v3406_v15 = vmax.f32 %v3405_v18, 0.0  ;;  %v3423_v22 = vld [vmem:[#allocation43_spill] sm:$0xff] }
  0xaa   :  { %3380 = vst [vmem:[#allocation31_spill] sm:$0xff] %v2458_v5  ;;  %v2476_v21 = vadd.f32 %v3394_v34, %v3389_v14  ;;  %v2480_v0 = vadd.f32 %v628_v2, %v3397_v57  ;;  %v2484_v11 = vadd.f32 %v637_v43, %v3400_v29  ;;  %v3409_v24 = vmax.f32 %v3408_v8, 0.0  ;;  %v3414_v43 = vld [vmem:[#allocation22_spill] sm:$0xff]  ;;  %v2530_v34 = vld [vmem:[#allocation2 + $0x8] sm:$0xff] }
  0xab   :  { %3387 = vst [vmem:[#allocation44_spill] sm:$0xff] %v2467_v62  ;;  %v2488_v44 = vadd.f32 %v646_v39, %v3403_v32  ;;  %v2492_v37 = vadd.f32 %v655_v12, %v3406_v15  ;;  %v700_v2 = vsel %vm2368_vm12, %v697_v61, %v694_v33  ;;  %v3412_v28 = vmax.f32 %v3411_v59, 0.0  ;;  %v3417_v39 = vld [vmem:[#allocation23_spill] sm:$0xff]  ;;  %v3427_v57 = vld [vmem:[#allocation38_spill] sm:$0xff]  ;;  %v2546_v61 = vld [vmem:[#allocation2 + $0x18] sm:$0xff] }
  0xac   :  { %3395 = vst [vmem:[#allocation52_spill] sm:$0xff] %v2476_v21  ;;  %v2496_v63 = vadd.f32 %v664_v55, %v3409_v24  ;;  %v3415_v36 = vmax.f32 %v3414_v43, 0.0  ;;  %v3418_v13 = vmax.f32 %v3417_v39, 0.0  ;;  %v3422_v52 = vsub.f32 0.0, %v3421_v27  ;;  %v2553_v33 = vld [vmem:[#allocation2 + $0x20] sm:$0xff]  ;;  %v2560_v55 = vld [vmem:[#allocation2 + $0x28] sm:$0xff] }
  0xad   :  { %3398 = vst [vmem:[#allocation32_spill] sm:$0xff] %v2480_v0  ;;  %v2502_v49 = vadd.f32 %v673_v54, %v3412_v28  ;;  %v3424_v14 = vmax.f32 %v3423_v22, 0.0  ;;  %v3428_v29 = vsub.f32 0.0, %v3427_v57  ;;  %v3439_v12 = vld [vmem:[#allocation42_spill] sm:$0xff]  ;;  %v3445_v42 = vld [vmem:[#allocation11_spill] sm:$0xff] }
  0xae   :  { %3401 = vst [vmem:[#allocation46_spill] sm:$0xff] %v2484_v11  ;;  %v2506_v9 = vadd.f32 %v682_v23, %v3415_v36  ;;  %v2510_v53 = vadd.f32 %v691_v10, %v3418_v13  ;;  %v2519_v23 = vld [vmem:[#allocation2] sm:$0xff]  ;;  %v2538_v36 = vld [vmem:[#allocation2 + $0x10] sm:$0xff]  ;;  %v3446_v27 = vsub.f32 0.0, %v3445_v42  ;;  %v2581_v54 = vld [vmem:[#allocation2 + $0x48] sm:$0xff] }
  0xaf   :  { %3404 = vst [vmem:[#allocation45_spill] sm:$0xff] %v2488_v44  ;;  %v741_v10 = vadd.f32 %v2519_v23, %v3422_v52  ;;  %v2526_v47 = vadd.f32 %v700_v2, %v3424_v14  ;;  %v742_v32 = vadd.f32 %v2530_v34, %v3428_v29  ;;  %v3430_v2 = vld [vmem:[#allocation39_spill] sm:$0xff]  ;;  %v3433_v29 = vld [vmem:[#allocation40_spill] sm:$0xff]  ;;  %v3442_v57 = vld [vmem:[#allocation30_spill] sm:$0xff] }
  0xb0   :  { %3407 = vst [vmem:[#allocation53_spill] sm:$0xff] %v2492_v37  ;;  %v3431_v13 = vsub.f32 0.0, %v3430_v2  ;;  %v3434_v15 = vsub.f32 0.0, %v3433_v29  ;;  %v3440_v29 = vsub.f32 0.0, %v3439_v12  ;;  %v2566_v2 = vld [vmem:[#allocation2 + $0x30] sm:$0xff]  ;;  %v2621_v39 = vld [vmem:[#allocation2 + $0x88] sm:$0xff] }
  0xb1   :  { %3410 = vst [vmem:[#allocation36_spill] sm:$0xff] %v2496_v63  ;;  %v761_v35 = vmul.f32 1.442695, %v741_v10  ;;  %v763_v28 = vmul.f32 1.442695, %v742_v32  ;;  %v2571_v10 = vld [vmem:[#allocation2 + $0x38] sm:$0xff] }
  0xb2   :  { %3413 = vst [vmem:[#allocation48_spill] sm:$0xff] %v2502_v49  ;;  %v743_v52 = vadd.f32 %v2538_v36, %v3431_v13  ;;  %v744_v24 = vadd.f32 %v2546_v61, %v3434_v15  ;;  %v3437_v13 = vsub.f32 0.0, %v3436_v7  ;;  %v746_v15 = vadd.f32 %v2560_v55, %v3440_v29  ;;  %v3448_v12 = vld [vmem:[#allocation24_spill] sm:$0xff] }
  0xb3   :  { %3416 = vst [vmem:[#allocation47_spill] sm:$0xff] %v2506_v9  ;;  %v3443_v7 = vsub.f32 0.0, %v3442_v57  ;;  %v748_v41 = vadd.f32 %v2571_v10, %v3446_v27  ;;  %v3449_v29 = vsub.f32 0.0, %v3448_v12  ;;  %1227 = vpow2.f32 %v761_v35  ;;  %v2631_v9 = vld [vmem:[#allocation2 + $0x98] sm:$0xff] }
  0xb4   :  { %3419 = vst [vmem:[#allocation54_spill] sm:$0xff] %v2510_v53  ;;  %v745_v14 = vadd.f32 %v2553_v33, %v3437_v13  ;;  %v767_v27 = vmul.f32 1.442695, %v744_v24  ;;  %v2606_v24 = vld [vmem:[#allocation2 + $0x70] sm:$0xff]  ;;  %1229 = vpow2.f32 %v763_v28  ;;  %v2611_v53 = vld [vmem:[#allocation2 + $0x78] sm:$0xff] }
  0xb5   :  { %3420 = vst [vmem:[#allocation15_spill] sm:$0xff] %v2519_v23  ;;  %v747_v13 = vadd.f32 %v2566_v2, %v3443_v7  ;;  %v2586_v7 = vld [vmem:[#allocation2 + $0x50] sm:$0xff] }
  0xb6   :  { %3425 = vst [vmem:[#allocation49_spill] sm:$0xff] %v2526_v47 }
  0xb7   :  { %3426 = vst [vmem:[#allocation51_spill] sm:$0xff] %v2530_v34 }
  0xb8   :  { %3429 = vst [vmem:[#allocation55_spill] sm:$0xff] %v2538_v36 }
  0xb9   :  { %3432 = vst [vmem:[#allocation16_spill] sm:$0xff] %v2546_v61  ;;  %v2576_v61 = vld [vmem:[#allocation2 + $0x40] sm:$0xff]  ;;  %v2639_v43 = vpop.eup %1227 }
  0xba   :  { %3435 = vst [vmem:[#allocation17_spill] sm:$0xff] %v2553_v33  ;;  %v765_v33 = vmul.f32 1.442695, %v743_v52  ;;  %v749_v32 = vadd.f32 %v2576_v61, %v3449_v29  ;;  %v2591_v52 = vld [vmem:[#allocation2 + $0x58] sm:$0xff]  ;;  %v2596_v29 = vld [vmem:[#allocation2 + $0x60] sm:$0xff] }
  0xbb   :  { %3438 = vst [vmem:[#allocation18_spill] sm:$0xff] %v2560_v55  ;;  %v3451_v55 = vld [vmem:[#allocation25_spill] sm:$0xff] }
  0xbc   :  { %3441 = vst [vmem:[#allocation19_spill] sm:$0xff] %v2566_v2  ;;  %v3452_v36 = vsub.f32 0.0, %v3451_v55  ;;  %v3454_v2 = vld [vmem:[#allocation33_spill] sm:$0xff]  ;;  %1231 = vpow2.f32 %v765_v33 }
  0xbd   :  { %3444 = vst [vmem:[#allocation20_spill] sm:$0xff] %v2571_v10  ;;  %v3455_v34 = vsub.f32 0.0, %v3454_v2  ;;  %v3457_v10 = vld [vmem:[#allocation12_spill] sm:$0xff]  ;;  %v3463_v2 = vld [vmem:[#allocation26_spill] sm:$0xff]  ;;  %1233 = vpow2.f32 %v767_v27 }
  0xbe   :  { %3447 = vst [vmem:[#allocation56_spill] sm:$0xff] %v2576_v61  ;;  %v750_v57 = vadd.f32 %v2581_v54, %v3452_v36  ;;  %v3458_v23 = vsub.f32 0.0, %v3457_v10  ;;  %v3460_v61 = vld [vmem:[#allocation27_spill] sm:$0xff]  ;;  %v769_v36 = vmul.f32 1.442695, %v745_v14  ;;  %v3464_v22 = vsub.f32 0.0, %v3463_v2 }
  0xbf   :  { %3450 = vst [vmem:[#allocation57_spill] sm:$0xff] %v2581_v54  ;;  %v751_v42 = vadd.f32 %v2586_v7, %v3455_v34  ;;  %v3461_v47 = vsub.f32 0.0, %v3460_v61  ;;  %v2601_v54 = vld [vmem:[#allocation2 + $0x68] sm:$0xff]  ;;  %v3469_v61 = vld [vmem:[#allocation13_spill] sm:$0xff]  ;;  %v2616_v14 = vld [vmem:[#allocation2 + $0x80] sm:$0xff] }
  0xc0   :  { %3453 = vst [vmem:[#allocation58_spill] sm:$0xff] %v2586_v7  ;;  %v752_v12 = vadd.f32 %v2591_v52, %v3458_v23  ;;  %v754_v34 = vadd.f32 %v2601_v54, %v3464_v22  ;;  %v3466_v7 = vld [vmem:[#allocation34_spill] sm:$0xff]  ;;  %1235 = vpow2.f32 %v769_v36 }
  0xc1   :  { %3456 = vst [vmem:[#allocation59_spill] sm:$0xff] %v2591_v52  ;;  %v753_v55 = vadd.f32 %v2596_v29, %v3461_v47  ;;  %v3467_v10 = vsub.f32 0.0, %v3466_v7  ;;  %v771_v52 = vmul.f32 1.442695, %v746_v15  ;;  %v3470_v47 = vsub.f32 0.0, %v3469_v61  ;;  %v3475_v7 = vld [vmem:[#allocation28_spill] sm:$0xff] }
  0xc2   :  { %3459 = vst [vmem:[#allocation60_spill] sm:$0xff] %v2596_v29  ;;  %v3472_v29 = vld [vmem:[#allocation29_spill] sm:$0xff]  ;;  %v2626_v15 = vld [vmem:[#allocation2 + $0x90] sm:$0xff] }
  0xc3   :  { %3462 = vst [vmem:[#allocation61_spill] sm:$0xff] %v2601_v54  ;;  %v755_v23 = vadd.f32 %v2606_v24, %v3467_v10  ;;  %v756_v35 = vadd.f32 %v2611_v53, %v3470_v47  ;;  %v3473_v2 = vsub.f32 0.0, %v3472_v29  ;;  %v773_v54 = vmul.f32 1.442695, %v747_v13  ;;  %v3481_v29 = vld [vmem:[#allocation14_spill] sm:$0xff] }
  0xc4   :  { %3465 = vst [vmem:[#allocation62_spill] sm:$0xff] %v2606_v24  ;;  %v3476_v10 = vsub.f32 0.0, %v3475_v7  ;;  %v3478_v24 = vld [vmem:[#allocation35_spill] sm:$0xff]  ;;  %v777_v13 = vmul.f32 1.442695, %v749_v32  ;;  %v3483_v7 = vsub.f32 0.0, %v2379_v1  ;;  %1237 = vpow2.f32 %v771_v52 }
  0xc5   :  { %3468 = vst [vmem:[#allocation63_spill] sm:$0xff] %v2611_v53  ;;  %v757_v22 = vadd.f32 %v2616_v14, %v3473_v2  ;;  %v3479_v61 = vsub.f32 0.0, %v3478_v24  ;;  %v775_v53 = vmul.f32 1.442695, %v748_v41  ;;  %v3482_v2 = vsub.f32 0.0, %v3481_v29 }
  0xc6   :  { %3471 = vst [vmem:[#allocation64_spill] sm:$0xff] %v2616_v14  ;;  %v758_v28 = vadd.f32 %v2621_v39, %v3476_v10  ;;  %v801_v10 = vadd.f32 %v3483_v7, %v1963_v17  ;;  %v781_v14 = vmul.f32 1.442695, %v751_v42  ;;  %v783_v24 = vmul.f32 1.442695, %v752_v12 }
  0xc7   :  { %3474 = vst [vmem:[#allocation65_spill] sm:$0xff] %v2621_v39  ;;  %v759_v47 = vadd.f32 %v2626_v15, %v3479_v61  ;;  %v760_v33 = vadd.f32 %v2631_v9, %v3482_v2  ;;  %v779_v39 = vmul.f32 1.442695, %v750_v57  ;;  %1239 = vpow2.f32 %v773_v54 }
  0xc8   :  { %3477 = vst [vmem:[#allocation66_spill] sm:$0xff] %v2626_v15  ;;  %v785_v61 = vmul.f32 1.442695, %v753_v55  ;;  %v787_v41 = vmul.f32 1.442695, %v754_v34  ;;  %v2641_v15 = vpop.eup %1229  ;;  %1241 = vpow2.f32 %v775_v53  ;;  %v3484_v12 = vsub.f32 0.0, %v2390_v45 }
  0xc9   :  { %3480 = vst [vmem:[#allocation67_spill] sm:$0xff] %v2631_v9  ;;  %v789_v27 = vmul.f32 1.442695, %v755_v23  ;;  %v791_v2 = vmul.f32 1.442695, %v756_v35  ;;  %v2643_v29 = vpop.eup %1231  ;;  %1243 = vpow2.f32 %v777_v13  ;;  %v3485_v53 = vsub.f32 0.0, %v2399_v16 }
  0xca   :  { %v793_v36 = vmul.f32 1.442695, %v757_v22  ;;  %v795_v32 = vmul.f32 1.442695, %v758_v28  ;;  %v2645_v17 = vmul.f32 1.442695, %v759_v47  ;;  %v802_v54 = vadd.f32 %v3484_v12, %v1969_v50  ;;  %v2652_v55 = vpop.eup %1233 }
  0xcb   :  { %v2647_v57 = vmul.f32 1.442695, %v760_v33  ;;  %1245 = vpow2.f32 %v779_v39  ;;  %v803_v42 = vadd.f32 %v3485_v53, %v1971_v60  ;;  %v3486_v7 = vsub.f32 0.0, %v2408_v19  ;;  %v2663_v35 = vpop.eup %1235 }
  0xcc   :  { %v3487_v34 = vsub.f32 0.0, %v2418_v31  ;;  %3488 = vst [vmem:[#allocation68_spill] sm:$0xff] %v2663_v35  ;;  %1247 = vpow2.f32 %v781_v14  ;;  %v3489_v50 = vsub.f32 0.0, %v2427_v25  ;;  %v3490_v39 = vsub.f32 0.0, %v2440_v40 }
  0xcd   :  { %v804_v52 = vadd.f32 %v3486_v7, %v1980_v58  ;;  %v3491_v60 = vsub.f32 0.0, %v2449_v6  ;;  %v2674_v58 = vpop.eup %1237  ;;  %1249 = vpow2.f32 %v783_v24  ;;  %v3494_v14 = vsub.f32 0.0, %v2467_v62  ;;  %v3513_v62 = vld [vmem:[#allocation49_spill] sm:$0xff] }
  0xce   :  { %v805_v23 = vadd.f32 %v3487_v34, %v1982_v20  ;;  %v806_v22 = vadd.f32 %v3489_v50, %v1988_v48  ;;  %v807_v28 = vadd.f32 %v3490_v39, %v1994_v26  ;;  %3492 = vst [vmem:[#allocation69_spill] sm:$0xff] %v2674_v58  ;;  %v3493_v20 = vsub.f32 0.0, %v2458_v5  ;;  %v2685_v7 = vpop.eup %1239 }
  0xcf   :  { %v808_v47 = vadd.f32 %v3491_v60, %v3368_v30  ;;  %v810_v13 = vadd.f32 %v3494_v14, %v3381_v56  ;;  %v3495_v12 = vsub.f32 0.0, %v2476_v21  ;;  %3496 = vst [vmem:[#allocation70_spill] sm:$0xff] %v2685_v7  ;;  %1251 = vpow2.f32 %v785_v61  ;;  %v2696_v14 = vpop.eup %1241 }
  0xd0   :  { %v809_v33 = vadd.f32 %v3493_v20, %v3374_v46  ;;  %v3497_v34 = vsub.f32 0.0, %v2480_v0  ;;  %v3498_v24 = vsub.f32 0.0, %v2484_v11  ;;  %v3499_v60 = vsub.f32 0.0, %v2488_v44  ;;  %3500 = vst [vmem:[#allocation71_spill] sm:$0xff] %v2696_v14  ;;  %v2704_v21 = vpop.eup %1243  ;;  %v3506_v11 = vld [vmem:[#allocation47_spill] sm:$0xff] }
  0xd1   :  { %v811_v53 = vadd.f32 %v3495_v12, %v3388_v3  ;;  %1253 = vpow2.f32 %v787_v41  ;;  %v3501_v12 = vsub.f32 0.0, %v2492_v37  ;;  %v3502_v61 = vsub.f32 0.0, %v2496_v63  ;;  %3503 = vst [vmem:[#allocation72_spill] sm:$0xff] %v2704_v21  ;;  %v2712_v35 = vpop.eup %1245  ;;  %v3510_v37 = vld [vmem:[#allocation54_spill] sm:$0xff] }
  0xd2   :  { %v812_v50 = vadd.f32 %v3497_v34, %v3396_v4  ;;  %v813_v39 = vadd.f32 %v3498_v24, %v3399_v38  ;;  %v814_v20 = vadd.f32 %v3499_v60, %v3402_v51  ;;  %v821_v34 = vmul.f32 1.442695, %v801_v10  ;;  %v3505_v60 = vld [vmem:[#allocation22_spill] sm:$0xff]  ;;  %v3512_v10 = vld [vmem:[#allocation43_spill] sm:$0xff]  ;;  %v2720_v6 = vpop.eup %1247 }
  0xd3   :  { %v815_v7 = vadd.f32 %v3501_v12, %v3405_v18  ;;  %v816_v0 = vadd.f32 %v3502_v61, %v3408_v8  ;;  %1255 = vpow2.f32 %v789_v27  ;;  %v3504_v24 = vsub.f32 0.0, %v2502_v49  ;;  %3508 = vst [vmem:[#allocation22_spill] sm:$0xff] %v2712_v35  ;;  %v3509_v12 = vld [vmem:[#allocation23_spill] sm:$0xff] }
  0xd4   :  { %v3507_v14 = vsub.f32 0.0, %v3506_v11  ;;  %v823_v58 = vmul.f32 1.442695, %v802_v54  ;;  %1257 = vpow2.f32 %v791_v2  ;;  %v3511_v63 = vsub.f32 0.0, %v3510_v37 }
  0xd5   :  { %v817_v44 = vadd.f32 %v3504_v24, %v3411_v59  ;;  %v3514_v21 = vsub.f32 0.0, %v3513_v62  ;;  %v825_v5 = vmul.f32 1.442695, %v803_v42  ;;  %1259 = vpow2.f32 %v793_v36 }
  0xd6   :  { %v818_v41 = vadd.f32 %v3507_v14, %v3505_v60  ;;  %v819_v61 = vadd.f32 %v3511_v63, %v3509_v12  ;;  %v827_v24 = vmul.f32 1.442695, %v804_v52  ;;  %v829_v49 = vmul.f32 1.442695, %v805_v23  ;;  %v2722_v14 = vpop.eup %1249  ;;  %v3556_v12 = vld [vmem:[#allocation40_spill] sm:$0xff] }
  0xd7   :  { %v820_v27 = vadd.f32 %v3514_v21, %v3512_v10  ;;  %v831_v11 = vmul.f32 1.442695, %v806_v22  ;;  %3515 = vst [vmem:[#allocation73_spill] sm:$0xff] %v2722_v14  ;;  %1261 = vpow2.f32 %v821_v34  ;;  %v833_v54 = vmul.f32 1.442695, %v807_v28  ;;  %v2726_v37 = vpop.eup %1251  ;;  %v1329_v34 = vld [vmem:[#allocation5 + $0x10] sm:$0xff] }
  0xd8   :  { %v835_v2 = vmul.f32 1.442695, %v808_v47  ;;  %v2724_v35 = vmul.f32 1.442695, %v809_v33  ;;  %3516 = vst [vmem:[#allocation74_spill] sm:$0xff] %v2726_v37  ;;  %1263 = vpow2.f32 %v823_v58  ;;  %v2734_v36 = vpop.eup %1253  ;;  %v3562_v10 = vld [vmem:[#allocation42_spill] sm:$0xff] }
  0xd9   :  { %v2728_v63 = vmul.f32 1.442695, %v810_v13  ;;  %v2730_v21 = vmul.f32 1.442695, %v811_v53  ;;  %v2732_v42 = vmul.f32 1.442695, %v812_v50  ;;  %1265 = vpow2.f32 %v795_v32  ;;  %v2742_v28 = vpop.eup %1255 }
  0xda   :  { %3517 = vst [vmem:[#allocation75_spill] sm:$0xff] %v2734_v36  ;;  %v2736_v52 = vmul.f32 1.442695, %v813_v39  ;;  %v2738_v23 = vmul.f32 1.442695, %v814_v20  ;;  %1267 = vpow2.f32 %v825_v5  ;;  %v2750_v13 = vpop.eup %1257  ;;  %v1327_v50 = vld [vmem:[#allocation5] sm:$0xff] }
  0xdb   :  { %v2740_v22 = vmul.f32 1.442695, %v815_v7  ;;  %3518 = vst [vmem:[#allocation76_spill] sm:$0xff] %v2742_v28  ;;  %v2744_v47 = vmul.f32 1.442695, %v816_v0  ;;  %1269 = vpow2.f32 %v2645_v17  ;;  %v3524_v7 = vld [vmem:[#allocation15_spill] sm:$0xff]  ;;  %v2758_v20 = vpop.eup %1259 }
  0xdc   :  { %v2746_v58 = vmul.f32 1.442695, %v817_v44  ;;  %v2748_v33 = vmul.f32 1.442695, %v818_v41  ;;  %3521 = vst [vmem:[#allocation79_spill] sm:$0xff] %v2750_v13  ;;  %v861_v39 = vsub.f32 %v1327_v50, %v3524_v7  ;;  %1271 = vpow2.f32 %v827_v24  ;;  %v1328_v5 = vld [vmem:[#allocation5 + $0x8] sm:$0xff] }
  0xdd   :  { %v2753_v32 = vmul.f32 1.442695, %v819_v61  ;;  %v2755_v53 = vmul.f32 1.442695, %v820_v27  ;;  %3525 = vst [vmem:[#allocation15_spill] sm:$0xff] %v2758_v20  ;;  %v3526_v0 = vld [vmem:[#allocation51_spill] sm:$0xff]  ;;  %v1262_v17 = vpop.eup %1261  ;;  %1273 = vpow2.f32 %v2647_v57 }
  0xde   :  { %3519 = vst [vmem:[#allocation77_spill] sm:$0xff] %v2746_v58  ;;  %v862_v44 = vsub.f32 %v1328_v5, %v3526_v0  ;;  %v3527_v41 = vld [vmem:[#allocation55_spill] sm:$0xff]  ;;  %v1330_v28 = vld [vmem:[#allocation5 + $0x18] sm:$0xff]  ;;  %v3528_v13 = vld [vmem:[#allocation16_spill] sm:$0xff]  ;;  %v1264_v0 = vpop.eup %1263  ;;  %1275 = vpow2.f32 %v829_v49  ;;  %v3551_v24 = vsub.f32 0.0, %v2390_v45 }
  0xdf   :  { %3520 = vst [vmem:[#allocation78_spill] sm:$0xff] %v2748_v33  ;;  %v863_v62 = vsub.f32 %v1329_v34, %v3527_v41  ;;  %v864_v36 = vsub.f32 %v1330_v28, %v3528_v13  ;;  %v2764_v61 = vld [vmem:[#allocation5 + $0x20] sm:$0xff]  ;;  %v3529_v27 = vld [vmem:[#allocation17_spill] sm:$0xff]  ;;  %v3531_v20 = vld [vmem:[#allocation19_spill] sm:$0xff]  ;;  %1277 = vpow2.f32 %v831_v11  ;;  %v941_v41 = vsub.f32 %v1262_v17, %v2639_v43 }
  0xe0   :  { %3522 = vst [vmem:[#allocation80_spill] sm:$0xff] %v2753_v32  ;;  %v865_v50 = vsub.f32 %v2764_v61, %v3529_v27  ;;  %v3530_v7 = vld [vmem:[#allocation18_spill] sm:$0xff]  ;;  %v3532_v34 = vld [vmem:[#allocation20_spill] sm:$0xff]  ;;  %v2778_v32 = vpop.eup %1265  ;;  %v942_v11 = vsub.f32 %v1264_v0, %v2641_v15  ;;  %1279 = vpow2.f32 %v833_v54  ;;  %v3546_v58 = vld [vmem:[#allocation37_spill] sm:$0xff]  ;;  %v3548_v27 = vsub.f32 0.0, %v2379_v1 }
  0xe1   :  { %3523 = vst [vmem:[#allocation81_spill] sm:$0xff] %v2755_v53  ;;  %v3533_v28 = vld [vmem:[#allocation56_spill] sm:$0xff]  ;;  %v1268_v14 = vpop.eup %1267  ;;  %v3540_v13 = vld [vmem:[#allocation62_spill] sm:$0xff]  ;;  %v3547_v53 = vsub.f32 0.0, %v3546_v58  ;;  %1281 = vpow2.f32 %v835_v2  ;;  %v3553_v43 = vld [vmem:[#allocation39_spill] sm:$0xff]  ;;  %v3555_v54 = vsub.f32 0.0, %v2399_v16 }
  0xe2   :  { %3535 = vst [vmem:[#allocation51_spill] sm:$0xff] %v2778_v32  ;;  %v2794_v61 = vpop.eup %1269  ;;  %v3549_v57 = vld [vmem:[#allocation38_spill] sm:$0xff]  ;;  %v3554_v15 = vsub.f32 0.0, %v3553_v43  ;;  %v3557_v32 = vsub.f32 0.0, %v3556_v12  ;;  %v3558_v58 = vsub.f32 0.0, %v2408_v19  ;;  %v943_v1 = vsub.f32 %v1268_v14, %v2643_v29  ;;  %v3559_v45 = vld [vmem:[#allocation41_spill] sm:$0xff] }
  0xe3   :  { %3543 = vst [vmem:[#allocation55_spill] sm:$0xff] %v2794_v61  ;;  %v1272_v33 = vpop.eup %1271  ;;  %v901_v61 = vsub.f32 %v3548_v27, %v3547_v53  ;;  %v3550_v59 = vsub.f32 0.0, %v3549_v57  ;;  %v881_v57 = vmul.f32 %v1262_v17, %v861_v39  ;;  %v882_v27 = vmul.f32 %v1264_v0, %v862_v44  ;;  %v3568_v17 = vld [vmem:[#allocation11_spill] sm:$0xff]  ;;  %v3570_v0 = vld [vmem:[#allocation50_spill] sm:$0xff] }
  0xe4   :  { %v2812_v5 = vpop.eup %1273  ;;  %v903_v49 = vsub.f32 %v3555_v54, %v3554_v15  ;;  %v904_v9 = vsub.f32 %v3558_v58, %v3557_v32  ;;  %v3563_v43 = vsub.f32 0.0, %v3562_v10  ;;  %v3564_v16 = vsub.f32 0.0, %v2427_v25  ;;  %v3565_v54 = vld [vmem:[#allocation30_spill] sm:$0xff]  ;;  %v3572_v25 = vld [vmem:[#allocation24_spill] sm:$0xff] }
  0xe5   :  { %v902_v37 = vsub.f32 %v3551_v24, %v3550_v59  ;;  %3552 = vst [vmem:[#allocation16_spill] sm:$0xff] %v2812_v5  ;;  %v1276_v53 = vpop.eup %1275  ;;  %v3560_v59 = vsub.f32 0.0, %v3559_v45  ;;  %v3561_v24 = vsub.f32 0.0, %v2418_v31  ;;  %v3566_v12 = vsub.f32 0.0, %v3565_v54 }
  0xe6   :  { %v906_v15 = vsub.f32 %v3564_v16, %v3563_v43  ;;  %v3567_v19 = vsub.f32 0.0, %v2440_v40  ;;  %v944_v29 = vsub.f32 %v1272_v33, %v2652_v55  ;;  %v961_v58 = vand.u32 2147483647, %v941_v41  ;;  %v1278_v44 = vpop.eup %1277  ;;  %v3576_v40 = vld [vmem:[#allocation25_spill] sm:$0xff]  ;;  %v3578_v55 = vld [vmem:[#allocation44_spill] sm:$0xff] }
  0xe7   :  { %v905_v2 = vsub.f32 %v3561_v24, %v3560_v59  ;;  %v962_v39 = vand.u32 2147483647, %v942_v11  ;;  %1283 = vpow2.f32 %v2724_v35  ;;  %v3569_v31 = vsub.f32 0.0, %v3568_v17  ;;  %v3574_v24 = vld [vmem:[#allocation31_spill] sm:$0xff] }
  0xe8   :  { %v907_v32 = vsub.f32 %v3567_v19, %v3566_v12  ;;  %v3571_v45 = vsub.f32 0.0, %v3570_v0  ;;  %v3573_v59 = vsub.f32 0.0, %v3572_v25  ;;  %v3575_v43 = vsub.f32 0.0, %v3574_v24  ;;  %v3580_v12 = vld [vmem:[#allocation68_spill] sm:$0xff]  ;;  %v3581_v24 = vld [vmem:[#allocation69_spill] sm:$0xff] }
  0xe9   :  { %v3577_v54 = vsub.f32 0.0, %v3576_v40  ;;  %v3579_v41 = vsub.f32 0.0, %v3578_v55  ;;  %1285 = vpow2.f32 %v2728_v63  ;;  %v883_v35 = vmul.f32 %v1268_v14, %v863_v62  ;;  %v3582_v63 = vld [vmem:[#allocation33_spill] sm:$0xff]  ;;  %v3584_v14 = vld [vmem:[#allocation52_spill] sm:$0xff] }
  0xea   :  { %v2841_v10 = vsub.f32 %v3571_v45, %v3569_v31  ;;  %v2847_v16 = vsub.f32 %v3575_v43, %v3573_v59  ;;  %v945_v19 = vsub.f32 %v1276_v53, %v3580_v12  ;;  %v963_v17 = vand.u32 2147483647, %v943_v1  ;;  %v1280_v31 = vpop.eup %1279  ;;  %v3586_v12 = vld [vmem:[#allocation12_spill] sm:$0xff] }
  0xeb   :  { %v2853_v11 = vsub.f32 %v3579_v41, %v3577_v54  ;;  %1287 = vpow2.f32 %v2730_v21  ;;  %v884_v0 = vmul.f32 %v1272_v33, %v864_v36  ;;  %v921_v45 = vadd.f32 %v901_v61, %v881_v57  ;;  %v1282_v59 = vpop.eup %1281  ;;  %v3588_v36 = vld [vmem:[#allocation32_spill] sm:$0xff]  ;;  %v3590_v57 = vld [vmem:[#allocation70_spill] sm:$0xff] }
  0xec   :  { %v922_v25 = vadd.f32 %v902_v37, %v882_v27  ;;  %v946_v43 = vsub.f32 %v1278_v44, %v3581_v24  ;;  %v964_v40 = vand.u32 2147483647, %v944_v29  ;;  %v981_v5 = vmul.f32 %v961_v58, %v961_v58  ;;  %v3592_v24 = vld [vmem:[#allocation71_spill] sm:$0xff] }
  0xed   :  { %v982_v55 = vmul.f32 %v962_v39, %v962_v39  ;;  %1289 = vpow2.f32 %v2732_v42  ;;  %v885_v54 = vmul.f32 %v1276_v53, %v865_v50  ;;  %v3583_v62 = vsub.f32 0.0, %v3582_v63  ;;  %v1284_v39 = vpop.eup %1283 }
  0xee   :  { %v3585_v41 = vsub.f32 0.0, %v3584_v14  ;;  %v3587_v21 = vsub.f32 0.0, %v3586_v12  ;;  %v3589_v33 = vsub.f32 0.0, %v3588_v36  ;;  %v923_v61 = vadd.f32 %v903_v49, %v883_v35  ;;  %v3596_v36 = vld [vmem:[#allocation46_spill] sm:$0xff] }
  0xef   :  { %v947_v27 = vsub.f32 %v1280_v31, %v3590_v57  ;;  %v965_v29 = vand.u32 2147483647, %v945_v19  ;;  %v983_v58 = vmul.f32 %v963_v17, %v963_v17  ;;  %1291 = vpow2.f32 %v2736_v52  ;;  %v3594_v52 = vld [vmem:[#allocation27_spill] sm:$0xff] }
  0xf0   :  { %v2864_v1 = vsub.f32 %v3585_v41, %v3583_v62  ;;  %v2870_v37 = vsub.f32 %v3589_v33, %v3587_v21  ;;  %v3591_v42 = vsub.f32 %v1988_v48, %v3530_v7  ;;  %v924_v53 = vadd.f32 %v904_v9, %v884_v0  ;;  %v1286_v62 = vpop.eup %1285 }
  0xf1   :  { %v948_v63 = vsub.f32 %v1282_v59, %v3592_v24  ;;  %v966_v14 = vand.u32 2147483647, %v946_v43  ;;  %v984_v41 = vmul.f32 %v964_v40, %v964_v40  ;;  %v1001_v12 = vmul.f32 %v981_v5, %v921_v45  ;;  %v1288_v49 = vpop.eup %1287 }
  0xf2   :  { %v886_v50 = vmul.f32 %v1278_v44, %v3591_v42  ;;  %v1002_v21 = vmul.f32 %v982_v55, %v922_v25  ;;  %1293 = vpow2.f32 %v2738_v23  ;;  %v3593_v35 = vsub.f32 %v1994_v26, %v3531_v20  ;;  %v3598_v44 = vld [vmem:[#allocation72_spill] sm:$0xff] }
  0xf3   :  { %v3595_v17 = vsub.f32 0.0, %v3594_v52  ;;  %v3597_v48 = vsub.f32 0.0, %v3596_v36  ;;  %v925_v9 = vadd.f32 %v905_v2, %v885_v54  ;;  %v949_v0 = vsub.f32 %v1284_v39, %v3598_v44  ;;  %v1290_v45 = vpop.eup %1289  ;;  %v3609_v52 = vld [vmem:[#allocation74_spill] sm:$0xff]  ;;  %v3611_v44 = vld [vmem:[#allocation59_spill] sm:$0xff] }
  0xf4   :  { %v887_v19 = vmul.f32 %v1280_v31, %v3593_v35  ;;  %v967_v43 = vand.u32 2147483647, %v947_v27  ;;  %v985_v40 = vmul.f32 %v965_v29, %v965_v29  ;;  %v1003_v5 = vmul.f32 %v983_v58, %v923_v61  ;;  %v3600_v31 = vld [vmem:[#allocation22_spill] sm:$0xff]  ;;  %v3602_v58 = vld [vmem:[#allocation77_spill] sm:$0xff] }
  0xf5   :  { %v2886_v7 = vsub.f32 %v3597_v48, %v3595_v17  ;;  %1295 = vpow2.f32 %v2740_v22  ;;  %v3599_v23 = vsub.f32 %v3368_v30, %v3532_v34  ;;  %v926_v20 = vadd.f32 %v906_v15, %v886_v50  ;;  %v1292_v2 = vpop.eup %1291  ;;  %v3603_v50 = vld [vmem:[#allocation57_spill] sm:$0xff] }
  0xf6   :  { %v950_v25 = vsub.f32 %v1286_v62, %v3600_v31  ;;  %v968_v55 = vand.u32 2147483647, %v948_v63  ;;  %v986_v33 = vmul.f32 %v966_v14, %v966_v14  ;;  %v1004_v57 = vmul.f32 %v984_v41, %v924_v53  ;;  %v3605_v63 = vld [vmem:[#allocation73_spill] sm:$0xff]  ;;  %v3606_v41 = vld [vmem:[#allocation78_spill] sm:$0xff] }
  0xf7   :  { %v888_v26 = vmul.f32 %v1282_v59, %v3599_v23  ;;  %v1021_v42 = vadd.f32 %v1002_v21, %v1001_v12  ;;  %1297 = vpow2.f32 %v2744_v47  ;;  %v3601_v54 = vsub.f32 %v3374_v46, %v3533_v28  ;;  %v3607_v12 = vld [vmem:[#allocation58_spill] sm:$0xff]  ;;  %v3614_v31 = vld [vmem:[#allocation81_spill] sm:$0xff] }
  0xf8   :  { %v927_v27 = vadd.f32 %v907_v32, %v887_v19  ;;  %v951_v22 = vsub.f32 %v1288_v49, %v2720_v6  ;;  %v969_v29 = vand.u32 2147483647, %v949_v0  ;;  %v987_v30 = vmul.f32 %v967_v43, %v967_v43  ;;  %v1294_v59 = vpop.eup %1293 }
  0xf9   :  { %v889_v61 = vmul.f32 %v1284_v39, %v3601_v54  ;;  %v1005_v34 = vmul.f32 %v985_v40, %v925_v9  ;;  %v1022_v15 = vadd.f32 %v1021_v42, %v1003_v5  ;;  %1299 = vpow2.f32 %v3602_v58  ;;  %v3610_v9 = vld [vmem:[#allocation80_spill] sm:$0xff]  ;;  %v3613_v5 = vld [vmem:[#allocation75_spill] sm:$0xff]  ;;  %v3622_v58 = vld [vmem:[#allocation45_spill] sm:$0xff] }
  0xfa   :  { %v3604_v53 = vsub.f32 %v3381_v56, %v3603_v50  ;;  %v928_v47 = vadd.f32 %v2841_v10, %v888_v26  ;;  %v952_v14 = vsub.f32 %v1290_v45, %v3605_v63  ;;  %v970_v46 = vand.u32 2147483647, %v950_v25  ;;  %v3615_v25 = vld [vmem:[#allocation60_spill] sm:$0xff] }
  0xfb   :  { %v988_v28 = vmul.f32 %v968_v55, %v968_v55  ;;  %v1006_v32 = vmul.f32 %v986_v33, %v926_v20  ;;  %v1023_v39 = vadd.f32 %v1022_v15, %v1004_v57  ;;  %v1296_v6 = vpop.eup %1295  ;;  %1301 = vpow2.f32 %v3606_v41  ;;  %v3617_v42 = vld [vmem:[#allocation76_spill] sm:$0xff] }
  0xfc   :  { %v890_v24 = vmul.f32 %v1286_v62, %v3604_v53  ;;  %v3608_v21 = vsub.f32 %v3388_v3, %v3607_v12  ;;  %v929_v19 = vadd.f32 %v2847_v16, %v889_v61  ;;  %v953_v56 = vsub.f32 %v1292_v2, %v3609_v52 }
  0xfd   :  { %v971_v62 = vand.u32 2147483647, %v951_v22  ;;  %v989_v17 = vmul.f32 %v969_v29, %v969_v29  ;;  %v1007_v10 = vmul.f32 %v987_v30, %v927_v27  ;;  %v1024_v36 = vadd.f32 %v1023_v39, %v1005_v34  ;;  %v1298_v48 = vpop.eup %1297  ;;  %v3618_v22 = vld [vmem:[#allocation61_spill] sm:$0xff]  ;;  %v3620_v34 = vld [vmem:[#allocation26_spill] sm:$0xff] }
  0xfe   :  { %v891_v35 = vmul.f32 %v1288_v49, %v3608_v21  ;;  %1303 = vpow2.f32 %v3610_v9  ;;  %v3612_v0 = vsub.f32 %v3396_v4, %v3611_v44  ;;  %v930_v40 = vadd.f32 %v2853_v11, %v890_v24  ;;  %v3628_v39 = vld [vmem:[#allocation53_spill] sm:$0xff] }
  0xff   :  { %v954_v3 = vsub.f32 %v1294_v59, %v3613_v5  ;;  %v972_v49 = vand.u32 2147483647, %v952_v14  ;;  %v990_v23 = vmul.f32 %v970_v46, %v970_v46  ;;  %v1008_v16 = vmul.f32 %v988_v28, %v928_v47  ;;  %v1300_v20 = vpop.eup %1299 }
 0x100   :  { %v892_v43 = vmul.f32 %v1290_v45, %v3612_v0  ;;  %v1025_v26 = vadd.f32 %v1024_v36, %v1006_v32  ;;  %1305 = vpow2.f32 %v3614_v31  ;;  %v3616_v55 = vsub.f32 %v3399_v38, %v3615_v25 }
 0x101   :  { %v931_v57 = vadd.f32 %v2864_v1, %v891_v35  ;;  %v955_v4 = vsub.f32 %v1296_v6, %v3617_v42  ;;  %v973_v45 = vand.u32 2147483647, %v953_v56  ;;  %v991_v54 = vmul.f32 %v971_v62, %v971_v62  ;;  %v1302_v27 = vpop.eup %1301  ;;  %v3630_v35 = vld [vmem:[#allocation15_spill] sm:$0xff] }
 0x102   :  { %v893_v33 = vmul.f32 %v1292_v2, %v3616_v55  ;;  %v1009_v11 = vmul.f32 %v989_v17, %v929_v19  ;;  %v1026_v61 = vadd.f32 %v1025_v26, %v1007_v10  ;;  %v3619_v29 = vsub.f32 %v3402_v51, %v3618_v22  ;;  %v3624_v2 = vld [vmem:[#allocation79_spill] sm:$0xff]  ;;  %v3626_v51 = vld [vmem:[#allocation34_spill] sm:$0xff]  ;;  %v3639_v26 = vld [vmem:[#allocation64_spill] sm:$0xff] }
 0x103   :  { %v3621_v15 = vsub.f32 0.0, %v3620_v34  ;;  %v3623_v50 = vsub.f32 0.0, %v3622_v58  ;;  %v932_v38 = vadd.f32 %v2870_v37, %v892_v43  ;;  %v956_v1 = vsub.f32 %v1298_v48, %v3624_v2  ;;  %v3631_v10 = vld [vmem:[#allocation63_spill] sm:$0xff]  ;;  %v3641_v55 = vld [vmem:[#allocation29_spill] sm:$0xff]  ;;  %v3652_v2 = vld [vmem:[#allocation16_spill] sm:$0xff] }
 0x104   :  { %v894_v30 = vmul.f32 %v1294_v59, %v3619_v29  ;;  %v974_v24 = vand.u32 2147483647, %v954_v3  ;;  %v992_v47 = vmul.f32 %v972_v49, %v972_v49  ;;  %v1010_v63 = vmul.f32 %v990_v23, %v930_v40  ;;  %v1304_v46 = vpop.eup %1303  ;;  %v3637_v40 = vld [vmem:[#allocation51_spill] sm:$0xff]  ;;  %v3646_v29 = vld [vmem:[#allocation65_spill] sm:$0xff] }
 0x105   :  { %v914_v53 = vsub.f32 %v3623_v50, %v3621_v15  ;;  %v1027_v14 = vadd.f32 %v1026_v61, %v1008_v16  ;;  %v3625_v28 = vsub.f32 %v3405_v18, %v3540_v13  ;;  %v3627_v59 = vsub.f32 0.0, %v3626_v51  ;;  %v3633_v18 = vld [vmem:[#allocation13_spill] sm:$0xff]  ;;  %v3648_v15 = vld [vmem:[#allocation28_spill] sm:$0xff]  ;;  %v3650_v50 = vld [vmem:[#allocation47_spill] sm:$0xff] }
 0x106   :  { %v3629_v41 = vsub.f32 0.0, %v3628_v39  ;;  %v933_v21 = vadd.f32 %v2886_v7, %v893_v33  ;;  %v957_v37 = vsub.f32 %v1300_v20, %v3630_v35  ;;  %v975_v19 = vand.u32 2147483647, %v955_v4  ;;  %v1306_v17 = vpop.eup %1305  ;;  %v3638_v16 = vld [vmem:[#allocation21_spill] sm:$0xff]  ;;  %v3645_v4 = vld [vmem:[#allocation55_spill] sm:$0xff] }
 0x107   :  { %v895_v32 = vmul.f32 %v1296_v6, %v3625_v28  ;;  %v993_v52 = vmul.f32 %v973_v45, %v973_v45  ;;  %v1011_v56 = vmul.f32 %v991_v54, %v931_v57  ;;  %v1028_v62 = vadd.f32 %v1027_v14, %v1009_v11  ;;  %v3635_v6 = vld [vmem:[#allocation36_spill] sm:$0xff]  ;;  %v3653_v28 = vld [vmem:[#allocation23_spill] sm:$0xff] }
 0x108   :  { %v915_v12 = vsub.f32 %v3629_v41, %v3627_v59  ;;  %v3632_v36 = vsub.f32 %v3408_v8, %v3631_v10  ;;  %v3634_v13 = vsub.f32 0.0, %v3633_v18  ;;  %v3636_v44 = vsub.f32 0.0, %v3635_v6  ;;  %v3643_v8 = vld [vmem:[#allocation48_spill] sm:$0xff]  ;;  %v3656_v39 = vld [vmem:[#allocation35_spill] sm:$0xff] }
 0x109   :  { %v934_v43 = vadd.f32 %v914_v53, %v894_v30  ;;  %v958_v5 = vsub.f32 %v1302_v27, %v3637_v40  ;;  %v976_v7 = vand.u32 2147483647, %v956_v1  ;;  %v994_v3 = vmul.f32 %v974_v24, %v974_v24 }
 0x10a   :  { %v896_v9 = vmul.f32 %v1298_v48, %v3632_v36  ;;  %v916_v0 = vsub.f32 %v3636_v44, %v3634_v13  ;;  %v1012_v49 = vmul.f32 %v992_v47, %v932_v38  ;;  %v1029_v23 = vadd.f32 %v1028_v62, %v1010_v63  ;;  %v3661_v62 = vld [vmem:[#allocation67_spill] sm:$0xff]  ;;  %v3665_v13 = vld [vmem:[#allocation49_spill] sm:$0xff] }
 0x10b   :  { %v3640_v31 = vsub.f32 %v3638_v16, %v3639_v26  ;;  %v3642_v33 = vsub.f32 0.0, %v3641_v55  ;;  %v3644_v48 = vsub.f32 0.0, %v3643_v8  ;;  %v935_v42 = vadd.f32 %v915_v12, %v895_v32  ;;  %v3654_v32 = vld [vmem:[#allocation66_spill] sm:$0xff] }
 0x10c   :  { %v959_v45 = vsub.f32 %v1304_v46, %v3645_v4  ;;  %v977_v54 = vand.u32 2147483647, %v957_v37  ;;  %v995_v11 = vmul.f32 %v975_v19, %v975_v19  ;;  %v1013_v61 = vmul.f32 %v993_v52, %v933_v21 }
 0x10d   :  { %v897_v25 = vmul.f32 %v1300_v20, %v3640_v31  ;;  %v917_v57 = vsub.f32 %v3644_v48, %v3642_v33  ;;  %v1030_v22 = vadd.f32 %v1029_v23, %v1011_v56  ;;  %v3647_v30 = vsub.f32 %v3505_v60, %v3646_v29  ;;  %v3658_v60 = vld [vmem:[#allocation54_spill] sm:$0xff]  ;;  %v3660_v56 = vld [vmem:[#allocation43_spill] sm:$0xff] }
 0x10e   :  { %v3649_v58 = vsub.f32 0.0, %v3648_v15  ;;  %v3651_v20 = vsub.f32 0.0, %v3650_v50  ;;  %v936_v38 = vadd.f32 %v916_v0, %v896_v9  ;;  %v960_v1 = vsub.f32 %v1306_v17, %v3652_v2  ;;  %v3663_v9 = vld [vmem:[#allocation14_spill] sm:$0xff] }
 0x10f   :  { %v898_v34 = vmul.f32 %v1302_v27, %v3647_v30  ;;  %v978_v24 = vand.u32 2147483647, %v958_v5  ;;  %v996_v47 = vmul.f32 %v976_v7, %v976_v7  ;;  %v1014_v63 = vmul.f32 %v994_v3, %v934_v43 }
 0x110   :  { %v918_v53 = vsub.f32 %v3651_v20, %v3649_v58  ;;  %v1031_v14 = vadd.f32 %v1030_v22, %v1012_v49  ;;  %v3655_v51 = vsub.f32 %v3653_v28, %v3654_v32  ;;  %v3657_v41 = vsub.f32 0.0, %v3656_v39 }
 0x111   :  { %v3659_v27 = vsub.f32 0.0, %v3658_v60  ;;  %v937_v21 = vadd.f32 %v917_v57, %v897_v25  ;;  %v979_v35 = vand.u32 2147483647, %v959_v45  ;;  %v997_v37 = vmul.f32 %v977_v54, %v977_v54 }
 0x112   :  { %v899_v59 = vmul.f32 %v1304_v46, %v3655_v51  ;;  %v1015_v19 = vmul.f32 %v995_v11, %v935_v42  ;;  %v1032_v52 = vadd.f32 %v1031_v14, %v1013_v61  ;;  %v3662_v10 = vsub.f32 %v3660_v56, %v3661_v62 }
 0x113   :  { %v919_v12 = vsub.f32 %v3659_v27, %v3657_v41  ;;  %v3664_v18 = vsub.f32 0.0, %v3663_v9  ;;  %v3666_v6 = vsub.f32 0.0, %v3665_v13  ;;  %v938_v46 = vadd.f32 %v918_v53, %v898_v34 }
 0x114   :  { %v900_v36 = vmul.f32 %v1306_v17, %v3662_v10  ;;  %v980_v0 = vand.u32 2147483647, %v960_v1  ;;  %v998_v43 = vmul.f32 %v978_v24, %v978_v24  ;;  %v1016_v40 = vmul.f32 %v996_v47, %v936_v38 }
 0x115   :  { %v920_v44 = vsub.f32 %v3666_v6, %v3664_v18  ;;  %v1033_v5 = vadd.f32 %v1032_v52, %v1014_v63  ;;  %v939_v7 = vadd.f32 %v919_v12, %v899_v59  ;;  %v999_v3 = vmul.f32 %v979_v35, %v979_v35 }
 0x116   :  { %v1017_v49 = vmul.f32 %v997_v37, %v937_v21  ;;  %v1000_v26 = vmul.f32 %v980_v0, %v980_v0  ;;  %v1018_v31 = vmul.f32 %v998_v43, %v938_v46 }
 0x117   :  { %v1034_v23 = vadd.f32 %v1033_v5, %v1015_v19  ;;  %v940_v16 = vadd.f32 %v920_v44, %v900_v36  ;;  %v1019_v55 = vmul.f32 %v999_v3, %v939_v7 }
 0x119   :  { %v1035_v25 = vadd.f32 %v1034_v23, %v1016_v40  ;;  %v1020_v33 = vmul.f32 %v1000_v26, %v940_v16 }
 0x11b   :  { %v1036_v17 = vadd.f32 %v1035_v25, %v1017_v49 }
 0x11d   :  { %v1037_v8 = vadd.f32 %v1036_v17, %v1018_v31 }
 0x11f   :  { %v1038_v48 = vadd.f32 %v1037_v8, %v1019_v55 }
 0x121   :  { %v1039_v57 = vadd.f32 %v1038_v48, %v1020_v33 }
 0x123   :  { %1042 = vst [vmem:[#allocation7] sm:$0xff] %v1039_v57 }
 0x124   :  { %1053 = dma.vmem_to_hbm [thread:$0]  %s1049_s1, 128, %s1051_s23, [#allocation4]  }
 0x125   :  { %1408 = dma.done.wait [#allocation4], 128  }
 0x126   :  { %1409 = vsyncadd [#allocation4], 4294967168 }
 0x127   :  { %1058 = vsyncpa [#allocation3], 1 }
 0x128   :  { %1059 = vsyncpa [#allocation6], 1 }
 0x129   :  { %1060 = vsyncpa [#allocation4], 1 }

</bundles_post_ra>
